<compile_context>
chip_gen: v6e
topology: v6e:2x2x1
jax: 0.10.0
libtpu: 0.0.40
codegen_flags: <defaults>
</compile_context>

<pallas_src>
import jax
import jax.numpy as jnp
from jax import lax
from jax.experimental import pallas as pl
from jax.experimental.pallas import tpu as pltpu


_HW = 16  # flattened 4x4 spatial axis (lanes)
# (lane in the 11-wide conv slab holding a valid output, lane of that pixel in the 4x4 image)
# blocks (bh,bw) in {0,1}^2:  slab lane E = 8*bh + 2*bw,  image lane P = (1+bh)*4 + (1+bw)
_BLOCK_LANES = ((0, 5), (2, 6), (8, 9), (10, 10))


def _make_fused_kernel(batch: int):
    """Fused conv1+ReLU -> conv2+ReLU -> +x kernel, specialized to C=3, H=W=4."""

    def kernel(x_ref, w1_ref, b1_ref, w2_ref, b2_ref, out_ref, h1_ref):
        # x_ref : (3*batch, 16)  rows = n*3+c, lanes = h*4+w
        # w1_ref: (6, 12)        cols = c*4 + kh*2 + kw
        # w2_ref: (3, 24)        cols = c*4 + kh*2 + kw
        # b1_ref: (6, 1), b2_ref: (3, 1)
        # h1_ref: (6, 16) VMEM scratch holding the intermediate activation.
        b1col = b1_ref[...]                        # (6, 1)
        b2col = b2_ref[...]                        # (3, 1)
        beta1 = jnp.maximum(b1col, 0.0)            # ReLU(b1): h1 border value
        relu_b2 = jnp.maximum(b2col, 0.0)          # ReLU(b2): conv2-output border value
        beta1_full = jnp.broadcast_to(beta1, (6, _HW))

        # Hoist the 36 weight columns once (shared across the batch loop).
        w1cols = [w1_ref[:, k:k + 1] for k in range(12)]   # each (6, 1)
        w2cols = [w2_ref[:, k:k + 1] for k in range(24)]   # each (3, 1)

        for n in range(batch):
            r0 = n * 3

            # ---- conv1: unrolled VPU broadcast-FMAs over shifted 11-lane slabs ----
            # t1[:, E] for E in {0,2,8,10} are the 4 output pixels that see data.
            t1 = None
            for c in range(3):
                row = r0 + c
                for kh in range(2):
                    for kw in range(2):
                        w_col = w1cols[c * 4 + kh * 2 + kw]                       # (6, 1)
                        d = kh * 4 + kw
                        x_row = x_ref[row:row + 1, d:d + 11]                      # (1, 11)
                        term = w_col * x_row                                      # (6, 11)
                        t1 = term if t1 is None else t1 + term

            # ---- materialize h1 = ReLU(conv1 + b1) in the VMEM scratch ----
            h1_ref[...] = beta1_full                         # border pixels = ReLU(b1)
            for e, p in _BLOCK_LANES:
                h1_ref[:, p:p + 1] = jnp.maximum(b1col + t1[:, e:e + 1], 0.0)

            # ---- conv2: same broadcast-FMA scheme over shifted slabs of h1 ----
            t2 = None
            for c in range(6):
                for kh in range(2):
                    for kw in range(2):
                        w_col = w2cols[c * 4 + kh * 2 + kw]                       # (3, 1)
                        d = kh * 4 + kw
                        h_row = h1_ref[c:c + 1, d:d + 11]                         # (1, 11)
                        term = w_col * h_row                                      # (3, 11)
                        t2 = term if t2 is None else t2 + term

            # ---- ReLU(conv2 + b2) + residual, written straight to the output ----
            out_ref[r0:r0 + 3, :] = x_ref[r0:r0 + 3, :] + relu_b2                 # border
            for e, p in _BLOCK_LANES:                                             # inner 2x2
                out_ref[r0:r0 + 3, p:p + 1] = (
                    x_ref[r0:r0 + 3, p:p + 1]
                    + jnp.maximum(b2col + t2[:, e:e + 1], 0.0))

    return kernel


@jax.jit
def skip_connection_forward(x_nchw, w1, b1, w2, b2):
    N, C, H, W = x_nchw.shape
    if (C, H, W) != (3, 4, 4):
        raise ValueError(
            "SkipConnection with Conv2d(k=2, s=2, p=2) only shape-checks its residual "
            f"add for C=3, H=W=4; got (C, H, W) = {(C, H, W)}.")

    rows = N * 3
    # Data-path glue is contiguous reshapes only (bitcasts under jit).
    x2d = x_nchw.reshape(rows, _HW)      # (N*C, H*W): channels on rows, pixels on lanes
    w1m = w1.reshape(6, 12)              # (o1, c*kh*kw)
    w2m = w2.reshape(3, 24)              # (o2, c*kh*kw)
    b1c = b1.reshape(6, 1)
    b2c = b2.reshape(3, 1)

    out2d = pl.pallas_call(
        _make_fused_kernel(N),
        out_shape=jax.ShapeDtypeStruct((rows, _HW), x_nchw.dtype),
        in_specs=[pl.BlockSpec(memory_space=pltpu.MemorySpace.VMEM)] * 5,
        out_specs=pl.BlockSpec(memory_space=pltpu.MemorySpace.VMEM),
        scratch_shapes=[pltpu.VMEM((6, _HW), jnp.float32)],
    )(x2d, w1m, b1c, w2m, b2c)

    return out2d.reshape(N, 3, 4, 4)


# ---------------------------------------------------------------------------
# Pure-JAX reference (for correctness check only)
# ---------------------------------------------------------------------------
def _ref_forward(x, w1, b1, w2, b2):
    dn = ("NCHW", "OIHW", "NCHW")
    y = lax.conv_general_dilated(x, w1, (2, 2), ((2, 2), (2, 2)),
                                 dimension_numbers=dn) + b1.reshape(1, -1, 1, 1)
    y = jnp.maximum(y, 0.0)
    y = lax.conv_general_dilated(y, w2, (2, 2), ((2, 2), (2, 2)),
                                 dimension_numbers=dn) + b2.reshape(1, -1, 1, 1)
    y = jnp.maximum(y, 0.0)
    return y + x


if __name__ == "__main__":
    key = jax.random.PRNGKey(0)
    k_x, k_w1, k_b1, k_w2, k_b2 = jax.random.split(key, 5)

    # H = W = 4 is the spatial size for which the residual add is shape-valid
    # (conv k=2, s=2, p=2 maps 4 -> 4 twice).
    x = jax.random.normal(k_x, (2, 3, 4, 4), dtype=jnp.float32)

    # Deterministic synthetic params (shapes from nn.Conv2d(3,6,2,...) / (6,3,2,...)).
    fan1 = 3 * 2 * 2
    fan2 = 6 * 2 * 2
    w1 = jax.random.uniform(k_w1, (6, 3, 2, 2), jnp.float32, -1.0, 1.0) / jnp.sqrt(fan1)
    b1 = jax.random.uniform(k_b1, (6,), jnp.float32, -1.0, 1.0) / jnp.sqrt(fan1)
    w2 = jax.random.uniform(k_w2, (3, 6, 2, 2), jnp.float32, -1.0, 1.0) / jnp.sqrt(fan2)
    b2 = jax.random.uniform(k_b2, (3,), jnp.float32, -1.0, 1.0) / jnp.sqrt(fan2)

    out = skip_connection_forward(x, w1, b1, w2, b2)
    out = jax.block_until_ready(out)

    ref = _ref_forward(x, w1, b1, w2, b2)
    assert out.shape == x.shape and out.dtype == x.dtype
    assert jnp.allclose(out, ref, atol=1e-5, rtol=1e-5), "mismatch vs reference"

    print("KERNEL_OK")
</pallas_src>

<mosaic_0001>
module attributes {stable_mosaic.version = 11 : i64} {
  func.func @kernel(%arg0: memref<6x16xf32, #tpu.memory_space<vmem>>, %arg1: memref<6x12xf32, #tpu.memory_space<vmem>>, %arg2: memref<6x1xf32, #tpu.memory_space<vmem>>, %arg3: memref<3x24xf32, #tpu.memory_space<vmem>>, %arg4: memref<3x1xf32, #tpu.memory_space<vmem>>, %arg5: memref<6x16xf32, #tpu.memory_space<vmem>>, %arg6: memref<6x16xf32, #tpu.memory_space<vmem>>) attributes {dimension_semantics = [], scalar_prefetch = 0 : i64, scratch_operands = 1 : i64, tpu.core_type = #tpu.core_type<tc>} {
    %c0 = arith.constant 0 : index
    %c0_0 = arith.constant 0 : index
    %0 = vector.load %arg2[%c0, %c0_0] : memref<6x1xf32, #tpu.memory_space<vmem>>, vector<6x1xf32>
    %c0_1 = arith.constant 0 : index
    %c0_2 = arith.constant 0 : index
    %1 = vector.load %arg4[%c0_1, %c0_2] : memref<3x1xf32, #tpu.memory_space<vmem>>, vector<3x1xf32>
    %cst = arith.constant 0.000000e+00 : f32
    %2 = vector.broadcast %cst : f32 to vector<6x1xf32>
    %3 = arith.maximumf %0, %2 : vector<6x1xf32>
    %cst_3 = arith.constant 0.000000e+00 : f32
    %4 = vector.broadcast %cst_3 : f32 to vector<3x1xf32>
    %5 = arith.maximumf %1, %4 : vector<3x1xf32>
    %6 = vector.shape_cast %3 : vector<6x1xf32> to vector<6x1xf32>
    %7 = vector.broadcast %6 : vector<6x1xf32> to vector<6x16xf32>
    %c0_4 = arith.constant 0 : index
    %c0_5 = arith.constant 0 : index
    %8 = vector.load %arg1[%c0_4, %c0_5] : memref<6x12xf32, #tpu.memory_space<vmem>>, vector<6x1xf32>
    %c0_6 = arith.constant 0 : index
    %c1 = arith.constant 1 : index
    %9 = vector.load %arg1[%c0_6, %c1] : memref<6x12xf32, #tpu.memory_space<vmem>>, vector<6x1xf32>
    %c0_7 = arith.constant 0 : index
    %c2 = arith.constant 2 : index
    %10 = vector.load %arg1[%c0_7, %c2] : memref<6x12xf32, #tpu.memory_space<vmem>>, vector<6x1xf32>
    %c0_8 = arith.constant 0 : index
    %c3 = arith.constant 3 : index
    %11 = vector.load %arg1[%c0_8, %c3] : memref<6x12xf32, #tpu.memory_space<vmem>>, vector<6x1xf32>
    %c0_9 = arith.constant 0 : index
    %c4 = arith.constant 4 : index
    %12 = vector.load %arg1[%c0_9, %c4] : memref<6x12xf32, #tpu.memory_space<vmem>>, vector<6x1xf32>
    %c0_10 = arith.constant 0 : index
    %c5 = arith.constant 5 : index
    %13 = vector.load %arg1[%c0_10, %c5] : memref<6x12xf32, #tpu.memory_space<vmem>>, vector<6x1xf32>
    %c0_11 = arith.constant 0 : index
    %c6 = arith.constant 6 : index
    %14 = vector.load %arg1[%c0_11, %c6] : memref<6x12xf32, #tpu.memory_space<vmem>>, vector<6x1xf32>
    %c0_12 = arith.constant 0 : index
    %c7 = arith.constant 7 : index
    %15 = vector.load %arg1[%c0_12, %c7] : memref<6x12xf32, #tpu.memory_space<vmem>>, vector<6x1xf32>
    %c0_13 = arith.constant 0 : index
    %c8 = arith.constant 8 : index
    %16 = vector.load %arg1[%c0_13, %c8] : memref<6x12xf32, #tpu.memory_space<vmem>>, vector<6x1xf32>
    %c0_14 = arith.constant 0 : index
    %c9 = arith.constant 9 : index
    %17 = vector.load %arg1[%c0_14, %c9] : memref<6x12xf32, #tpu.memory_space<vmem>>, vector<6x1xf32>
    %c0_15 = arith.constant 0 : index
    %c10 = arith.constant 10 : index
    %18 = vector.load %arg1[%c0_15, %c10] : memref<6x12xf32, #tpu.memory_space<vmem>>, vector<6x1xf32>
    %c0_16 = arith.constant 0 : index
    %c11 = arith.constant 11 : index
    %19 = vector.load %arg1[%c0_16, %c11] : memref<6x12xf32, #tpu.memory_space<vmem>>, vector<6x1xf32>
    %c0_17 = arith.constant 0 : index
    %c0_18 = arith.constant 0 : index
    %20 = vector.load %arg3[%c0_17, %c0_18] : memref<3x24xf32, #tpu.memory_space<vmem>>, vector<3x1xf32>
    %c0_19 = arith.constant 0 : index
    %c1_20 = arith.constant 1 : index
    %21 = vector.load %arg3[%c0_19, %c1_20] : memref<3x24xf32, #tpu.memory_space<vmem>>, vector<3x1xf32>
    %c0_21 = arith.constant 0 : index
    %c2_22 = arith.constant 2 : index
    %22 = vector.load %arg3[%c0_21, %c2_22] : memref<3x24xf32, #tpu.memory_space<vmem>>, vector<3x1xf32>
    %c0_23 = arith.constant 0 : index
    %c3_24 = arith.constant 3 : index
    %23 = vector.load %arg3[%c0_23, %c3_24] : memref<3x24xf32, #tpu.memory_space<vmem>>, vector<3x1xf32>
    %c0_25 = arith.constant 0 : index
    %c4_26 = arith.constant 4 : index
    %24 = vector.load %arg3[%c0_25, %c4_26] : memref<3x24xf32, #tpu.memory_space<vmem>>, vector<3x1xf32>
    %c0_27 = arith.constant 0 : index
    %c5_28 = arith.constant 5 : index
    %25 = vector.load %arg3[%c0_27, %c5_28] : memref<3x24xf32, #tpu.memory_space<vmem>>, vector<3x1xf32>
    %c0_29 = arith.constant 0 : index
    %c6_30 = arith.constant 6 : index
    %26 = vector.load %arg3[%c0_29, %c6_30] : memref<3x24xf32, #tpu.memory_space<vmem>>, vector<3x1xf32>
    %c0_31 = arith.constant 0 : index
    %c7_32 = arith.constant 7 : index
    %27 = vector.load %arg3[%c0_31, %c7_32] : memref<3x24xf32, #tpu.memory_space<vmem>>, vector<3x1xf32>
    %c0_33 = arith.constant 0 : index
    %c8_34 = arith.constant 8 : index
    %28 = vector.load %arg3[%c0_33, %c8_34] : memref<3x24xf32, #tpu.memory_space<vmem>>, vector<3x1xf32>
    %c0_35 = arith.constant 0 : index
    %c9_36 = arith.constant 9 : index
    %29 = vector.load %arg3[%c0_35, %c9_36] : memref<3x24xf32, #tpu.memory_space<vmem>>, vector<3x1xf32>
    %c0_37 = arith.constant 0 : index
    %c10_38 = arith.constant 10 : index
    %30 = vector.load %arg3[%c0_37, %c10_38] : memref<3x24xf32, #tpu.memory_space<vmem>>, vector<3x1xf32>
    %c0_39 = arith.constant 0 : index
    %c11_40 = arith.constant 11 : index
    %31 = vector.load %arg3[%c0_39, %c11_40] : memref<3x24xf32, #tpu.memory_space<vmem>>, vector<3x1xf32>
    %c0_41 = arith.constant 0 : index
    %c12 = arith.constant 12 : index
    %32 = vector.load %arg3[%c0_41, %c12] : memref<3x24xf32, #tpu.memory_space<vmem>>, vector<3x1xf32>
    %c0_42 = arith.constant 0 : index
    %c13 = arith.constant 13 : index
    %33 = vector.load %arg3[%c0_42, %c13] : memref<3x24xf32, #tpu.memory_space<vmem>>, vector<3x1xf32>
    %c0_43 = arith.constant 0 : index
    %c14 = arith.constant 14 : index
    %34 = vector.load %arg3[%c0_43, %c14] : memref<3x24xf32, #tpu.memory_space<vmem>>, vector<3x1xf32>
    %c0_44 = arith.constant 0 : index
    %c15 = arith.constant 15 : index
    %35 = vector.load %arg3[%c0_44, %c15] : memref<3x24xf32, #tpu.memory_space<vmem>>, vector<3x1xf32>
    %c0_45 = arith.constant 0 : index
    %c16 = arith.constant 16 : index
    %36 = vector.load %arg3[%c0_45, %c16] : memref<3x24xf32, #tpu.memory_space<vmem>>, vector<3x1xf32>
    %c0_46 = arith.constant 0 : index
    %c17 = arith.constant 17 : index
    %37 = vector.load %arg3[%c0_46, %c17] : memref<3x24xf32, #tpu.memory_space<vmem>>, vector<3x1xf32>
    %c0_47 = arith.constant 0 : index
    %c18 = arith.constant 18 : index
    %38 = vector.load %arg3[%c0_47, %c18] : memref<3x24xf32, #tpu.memory_space<vmem>>, vector<3x1xf32>
    %c0_48 = arith.constant 0 : index
    %c19 = arith.constant 19 : index
    %39 = vector.load %arg3[%c0_48, %c19] : memref<3x24xf32, #tpu.memory_space<vmem>>, vector<3x1xf32>
    %c0_49 = arith.constant 0 : index
    %c20 = arith.constant 20 : index
    %40 = vector.load %arg3[%c0_49, %c20] : memref<3x24xf32, #tpu.memory_space<vmem>>, vector<3x1xf32>
    %c0_50 = arith.constant 0 : index
    %c21 = arith.constant 21 : index
    %41 = vector.load %arg3[%c0_50, %c21] : memref<3x24xf32, #tpu.memory_space<vmem>>, vector<3x1xf32>
    %c0_51 = arith.constant 0 : index
    %c22 = arith.constant 22 : index
    %42 = vector.load %arg3[%c0_51, %c22] : memref<3x24xf32, #tpu.memory_space<vmem>>, vector<3x1xf32>
    %c0_52 = arith.constant 0 : index
    %c23 = arith.constant 23 : index
    %43 = vector.load %arg3[%c0_52, %c23] : memref<3x24xf32, #tpu.memory_space<vmem>>, vector<3x1xf32>
    %c0_53 = arith.constant 0 : index
    %c0_54 = arith.constant 0 : index
    %44 = vector.load %arg0[%c0_53, %c0_54] : memref<6x16xf32, #tpu.memory_space<vmem>>, vector<1x11xf32>
    %45 = vector.broadcast %8 : vector<6x1xf32> to vector<6x11xf32>
    %46 = vector.broadcast %44 : vector<1x11xf32> to vector<6x11xf32>
    %47 = arith.mulf %45, %46 : vector<6x11xf32>
    %c0_55 = arith.constant 0 : index
    %c1_56 = arith.constant 1 : index
    %48 = vector.load %arg0[%c0_55, %c1_56] : memref<6x16xf32, #tpu.memory_space<vmem>>, vector<1x11xf32>
    %49 = vector.broadcast %9 : vector<6x1xf32> to vector<6x11xf32>
    %50 = vector.broadcast %48 : vector<1x11xf32> to vector<6x11xf32>
    %51 = arith.mulf %49, %50 : vector<6x11xf32>
    %52 = arith.addf %47, %51 : vector<6x11xf32>
    %c0_57 = arith.constant 0 : index
    %c4_58 = arith.constant 4 : index
    %53 = vector.load %arg0[%c0_57, %c4_58] : memref<6x16xf32, #tpu.memory_space<vmem>>, vector<1x11xf32>
    %54 = vector.broadcast %10 : vector<6x1xf32> to vector<6x11xf32>
    %55 = vector.broadcast %53 : vector<1x11xf32> to vector<6x11xf32>
    %56 = arith.mulf %54, %55 : vector<6x11xf32>
    %57 = arith.addf %52, %56 : vector<6x11xf32>
    %c0_59 = arith.constant 0 : index
    %c5_60 = arith.constant 5 : index
    %58 = vector.load %arg0[%c0_59, %c5_60] : memref<6x16xf32, #tpu.memory_space<vmem>>, vector<1x11xf32>
    %59 = vector.broadcast %11 : vector<6x1xf32> to vector<6x11xf32>
    %60 = vector.broadcast %58 : vector<1x11xf32> to vector<6x11xf32>
    %61 = arith.mulf %59, %60 : vector<6x11xf32>
    %62 = arith.addf %57, %61 : vector<6x11xf32>
    %c1_61 = arith.constant 1 : index
    %c0_62 = arith.constant 0 : index
    %63 = vector.load %arg0[%c1_61, %c0_62] : memref<6x16xf32, #tpu.memory_space<vmem>>, vector<1x11xf32>
    %64 = vector.broadcast %12 : vector<6x1xf32> to vector<6x11xf32>
    %65 = vector.broadcast %63 : vector<1x11xf32> to vector<6x11xf32>
    %66 = arith.mulf %64, %65 : vector<6x11xf32>
    %67 = arith.addf %62, %66 : vector<6x11xf32>
    %c1_63 = arith.constant 1 : index
    %c1_64 = arith.constant 1 : index
    %68 = vector.load %arg0[%c1_63, %c1_64] : memref<6x16xf32, #tpu.memory_space<vmem>>, vector<1x11xf32>
    %69 = vector.broadcast %13 : vector<6x1xf32> to vector<6x11xf32>
    %70 = vector.broadcast %68 : vector<1x11xf32> to vector<6x11xf32>
    %71 = arith.mulf %69, %70 : vector<6x11xf32>
    %72 = arith.addf %67, %71 : vector<6x11xf32>
    %c1_65 = arith.constant 1 : index
    %c4_66 = arith.constant 4 : index
    %73 = vector.load %arg0[%c1_65, %c4_66] : memref<6x16xf32, #tpu.memory_space<vmem>>, vector<1x11xf32>
    %74 = vector.broadcast %14 : vector<6x1xf32> to vector<6x11xf32>
    %75 = vector.broadcast %73 : vector<1x11xf32> to vector<6x11xf32>
    %76 = arith.mulf %74, %75 : vector<6x11xf32>
    %77 = arith.addf %72, %76 : vector<6x11xf32>
    %c1_67 = arith.constant 1 : index
    %c5_68 = arith.constant 5 : index
    %78 = vector.load %arg0[%c1_67, %c5_68] : memref<6x16xf32, #tpu.memory_space<vmem>>, vector<1x11xf32>
    %79 = vector.broadcast %15 : vector<6x1xf32> to vector<6x11xf32>
    %80 = vector.broadcast %78 : vector<1x11xf32> to vector<6x11xf32>
    %81 = arith.mulf %79, %80 : vector<6x11xf32>
    %82 = arith.addf %77, %81 : vector<6x11xf32>
    %c2_69 = arith.constant 2 : index
    %c0_70 = arith.constant 0 : index
    %83 = vector.load %arg0[%c2_69, %c0_70] : memref<6x16xf32, #tpu.memory_space<vmem>>, vector<1x11xf32>
    %84 = vector.broadcast %16 : vector<6x1xf32> to vector<6x11xf32>
    %85 = vector.broadcast %83 : vector<1x11xf32> to vector<6x11xf32>
    %86 = arith.mulf %84, %85 : vector<6x11xf32>
    %87 = arith.addf %82, %86 : vector<6x11xf32>
    %c2_71 = arith.constant 2 : index
    %c1_72 = arith.constant 1 : index
    %88 = vector.load %arg0[%c2_71, %c1_72] : memref<6x16xf32, #tpu.memory_space<vmem>>, vector<1x11xf32>
    %89 = vector.broadcast %17 : vector<6x1xf32> to vector<6x11xf32>
    %90 = vector.broadcast %88 : vector<1x11xf32> to vector<6x11xf32>
    %91 = arith.mulf %89, %90 : vector<6x11xf32>
    %92 = arith.addf %87, %91 : vector<6x11xf32>
    %c2_73 = arith.constant 2 : index
    %c4_74 = arith.constant 4 : index
    %93 = vector.load %arg0[%c2_73, %c4_74] : memref<6x16xf32, #tpu.memory_space<vmem>>, vector<1x11xf32>
    %94 = vector.broadcast %18 : vector<6x1xf32> to vector<6x11xf32>
    %95 = vector.broadcast %93 : vector<1x11xf32> to vector<6x11xf32>
    %96 = arith.mulf %94, %95 : vector<6x11xf32>
    %97 = arith.addf %92, %96 : vector<6x11xf32>
    %c2_75 = arith.constant 2 : index
    %c5_76 = arith.constant 5 : index
    %98 = vector.load %arg0[%c2_75, %c5_76] : memref<6x16xf32, #tpu.memory_space<vmem>>, vector<1x11xf32>
    %99 = vector.broadcast %19 : vector<6x1xf32> to vector<6x11xf32>
    %100 = vector.broadcast %98 : vector<1x11xf32> to vector<6x11xf32>
    %101 = arith.mulf %99, %100 : vector<6x11xf32>
    %102 = arith.addf %97, %101 : vector<6x11xf32>
    %c0_77 = arith.constant 0 : index
    %c0_78 = arith.constant 0 : index
    %103 = vector.load %arg6[%c0_77, %c0_78] : memref<6x16xf32, #tpu.memory_space<vmem>>, vector<6x16xf32>
    tpu.vector_store %arg6[%c0_77, %c0_78], %7 {strides = array<i32>} : memref<6x16xf32, #tpu.memory_space<vmem>>, vector<6x16xf32>,
    %104 = vector.extract_strided_slice %102 {offsets = [0, 0], sizes = [6, 1], strides = [1, 1]} : vector<6x11xf32> to vector<6x1xf32>
    %105 = arith.addf %0, %104 : vector<6x1xf32>
    %cst_79 = arith.constant 0.000000e+00 : f32
    %106 = vector.broadcast %cst_79 : f32 to vector<6x1xf32>
    %107 = arith.maximumf %105, %106 : vector<6x1xf32>
    %c0_80 = arith.constant 0 : index
    %c5_81 = arith.constant 5 : index
    %108 = vector.load %arg6[%c0_80, %c5_81] : memref<6x16xf32, #tpu.memory_space<vmem>>, vector<6x1xf32>
    tpu.vector_store %arg6[%c0_80, %c5_81], %107 {strides = array<i32>} : memref<6x16xf32, #tpu.memory_space<vmem>>, vector<6x1xf32>,
    %109 = vector.extract_strided_slice %102 {offsets = [0, 2], sizes = [6, 1], strides = [1, 1]} : vector<6x11xf32> to vector<6x1xf32>
    %110 = arith.addf %0, %109 : vector<6x1xf32>
    %cst_82 = arith.constant 0.000000e+00 : f32
    %111 = vector.broadcast %cst_82 : f32 to vector<6x1xf32>
    %112 = arith.maximumf %110, %111 : vector<6x1xf32>
    %c0_83 = arith.constant 0 : index
    %c6_84 = arith.constant 6 : index
    %113 = vector.load %arg6[%c0_83, %c6_84] : memref<6x16xf32, #tpu.memory_space<vmem>>, vector<6x1xf32>
    tpu.vector_store %arg6[%c0_83, %c6_84], %112 {strides = array<i32>} : memref<6x16xf32, #tpu.memory_space<vmem>>, vector<6x1xf32>,
    %114 = vector.extract_strided_slice %102 {offsets = [0, 8], sizes = [6, 1], strides = [1, 1]} : vector<6x11xf32> to vector<6x1xf32>
    %115 = arith.addf %0, %114 : vector<6x1xf32>
    %cst_85 = arith.constant 0.000000e+00 : f32
    %116 = vector.broadcast %cst_85 : f32 to vector<6x1xf32>
    %117 = arith.maximumf %115, %116 : vector<6x1xf32>
    %c0_86 = arith.constant 0 : index
    %c9_87 = arith.constant 9 : index
    %118 = vector.load %arg6[%c0_86, %c9_87] : memref<6x16xf32, #tpu.memory_space<vmem>>, vector<6x1xf32>
    tpu.vector_store %arg6[%c0_86, %c9_87], %117 {strides = array<i32>} : memref<6x16xf32, #tpu.memory_space<vmem>>, vector<6x1xf32>,
    %119 = vector.extract_strided_slice %102 {offsets = [0, 10], sizes = [6, 1], strides = [1, 1]} : vector<6x11xf32> to vector<6x1xf32>
    %120 = arith.addf %0, %119 : vector<6x1xf32>
    %cst_88 = arith.constant 0.000000e+00 : f32
    %121 = vector.broadcast %cst_88 : f32 to vector<6x1xf32>
    %122 = arith.maximumf %120, %121 : vector<6x1xf32>
    %c0_89 = arith.constant 0 : index
    %c10_90 = arith.constant 10 : index
    %123 = vector.load %arg6[%c0_89, %c10_90] : memref<6x16xf32, #tpu.memory_space<vmem>>, vector<6x1xf32>
    tpu.vector_store %arg6[%c0_89, %c10_90], %122 {strides = array<i32>} : memref<6x16xf32, #tpu.memory_space<vmem>>, vector<6x1xf32>,
    %c0_91 = arith.constant 0 : index
    %c0_92 = arith.constant 0 : index
    %124 = vector.load %arg6[%c0_91, %c0_92] : memref<6x16xf32, #tpu.memory_space<vmem>>, vector<1x11xf32>
    %125 = vector.broadcast %20 : vector<3x1xf32> to vector<3x11xf32>
    %126 = vector.broadcast %124 : vector<1x11xf32> to vector<3x11xf32>
    %127 = arith.mulf %125, %126 : vector<3x11xf32>
    %c0_93 = arith.constant 0 : index
    %c1_94 = arith.constant 1 : index
    %128 = vector.load %arg6[%c0_93, %c1_94] : memref<6x16xf32, #tpu.memory_space<vmem>>, vector<1x11xf32>
    %129 = vector.broadcast %21 : vector<3x1xf32> to vector<3x11xf32>
    %130 = vector.broadcast %128 : vector<1x11xf32> to vector<3x11xf32>
    %131 = arith.mulf %129, %130 : vector<3x11xf32>
    %132 = arith.addf %127, %131 : vector<3x11xf32>
    %c0_95 = arith.constant 0 : index
    %c4_96 = arith.constant 4 : index
    %133 = vector.load %arg6[%c0_95, %c4_96] : memref<6x16xf32, #tpu.memory_space<vmem>>, vector<1x11xf32>
    %134 = vector.broadcast %22 : vector<3x1xf32> to vector<3x11xf32>
    %135 = vector.broadcast %133 : vector<1x11xf32> to vector<3x11xf32>
    %136 = arith.mulf %134, %135 : vector<3x11xf32>
    %137 = arith.addf %132, %136 : vector<3x11xf32>
    %c0_97 = arith.constant 0 : index
    %c5_98 = arith.constant 5 : index
    %138 = vector.load %arg6[%c0_97, %c5_98] : memref<6x16xf32, #tpu.memory_space<vmem>>, vector<1x11xf32>
    %139 = vector.broadcast %23 : vector<3x1xf32> to vector<3x11xf32>
    %140 = vector.broadcast %138 : vector<1x11xf32> to vector<3x11xf32>
    %141 = arith.mulf %139, %140 : vector<3x11xf32>
    %142 = arith.addf %137, %141 : vector<3x11xf32>
    %c1_99 = arith.constant 1 : index
    %c0_100 = arith.constant 0 : index
    %143 = vector.load %arg6[%c1_99, %c0_100] : memref<6x16xf32, #tpu.memory_space<vmem>>, vector<1x11xf32>
    %144 = vector.broadcast %24 : vector<3x1xf32> to vector<3x11xf32>
    %145 = vector.broadcast %143 : vector<1x11xf32> to vector<3x11xf32>
    %146 = arith.mulf %144, %145 : vector<3x11xf32>
    %147 = arith.addf %142, %146 : vector<3x11xf32>
    %c1_101 = arith.constant 1 : index
    %c1_102 = arith.constant 1 : index
    %148 = vector.load %arg6[%c1_101, %c1_102] : memref<6x16xf32, #tpu.memory_space<vmem>>, vector<1x11xf32>
    %149 = vector.broadcast %25 : vector<3x1xf32> to vector<3x11xf32>
    %150 = vector.broadcast %148 : vector<1x11xf32> to vector<3x11xf32>
    %151 = arith.mulf %149, %150 : vector<3x11xf32>
    %152 = arith.addf %147, %151 : vector<3x11xf32>
    %c1_103 = arith.constant 1 : index
    %c4_104 = arith.constant 4 : index
    %153 = vector.load %arg6[%c1_103, %c4_104] : memref<6x16xf32, #tpu.memory_space<vmem>>, vector<1x11xf32>
    %154 = vector.broadcast %26 : vector<3x1xf32> to vector<3x11xf32>
    %155 = vector.broadcast %153 : vector<1x11xf32> to vector<3x11xf32>
    %156 = arith.mulf %154, %155 : vector<3x11xf32>
    %157 = arith.addf %152, %156 : vector<3x11xf32>
    %c1_105 = arith.constant 1 : index
    %c5_106 = arith.constant 5 : index
    %158 = vector.load %arg6[%c1_105, %c5_106] : memref<6x16xf32, #tpu.memory_space<vmem>>, vector<1x11xf32>
    %159 = vector.broadcast %27 : vector<3x1xf32> to vector<3x11xf32>
    %160 = vector.broadcast %158 : vector<1x11xf32> to vector<3x11xf32>
    %161 = arith.mulf %159, %160 : vector<3x11xf32>
    %162 = arith.addf %157, %161 : vector<3x11xf32>
    %c2_107 = arith.constant 2 : index
    %c0_108 = arith.constant 0 : index
    %163 = vector.load %arg6[%c2_107, %c0_108] : memref<6x16xf32, #tpu.memory_space<vmem>>, vector<1x11xf32>
    %164 = vector.broadcast %28 : vector<3x1xf32> to vector<3x11xf32>
    %165 = vector.broadcast %163 : vector<1x11xf32> to vector<3x11xf32>
    %166 = arith.mulf %164, %165 : vector<3x11xf32>
    %167 = arith.addf %162, %166 : vector<3x11xf32>
    %c2_109 = arith.constant 2 : index
    %c1_110 = arith.constant 1 : index
    %168 = vector.load %arg6[%c2_109, %c1_110] : memref<6x16xf32, #tpu.memory_space<vmem>>, vector<1x11xf32>
    %169 = vector.broadcast %29 : vector<3x1xf32> to vector<3x11xf32>
    %170 = vector.broadcast %168 : vector<1x11xf32> to vector<3x11xf32>
    %171 = arith.mulf %169, %170 : vector<3x11xf32>
    %172 = arith.addf %167, %171 : vector<3x11xf32>
    %c2_111 = arith.constant 2 : index
    %c4_112 = arith.constant 4 : index
    %173 = vector.load %arg6[%c2_111, %c4_112] : memref<6x16xf32, #tpu.memory_space<vmem>>, vector<1x11xf32>
    %174 = vector.broadcast %30 : vector<3x1xf32> to vector<3x11xf32>
    %175 = vector.broadcast %173 : vector<1x11xf32> to vector<3x11xf32>
    %176 = arith.mulf %174, %175 : vector<3x11xf32>
    %177 = arith.addf %172, %176 : vector<3x11xf32>
    %c2_113 = arith.constant 2 : index
    %c5_114 = arith.constant 5 : index
    %178 = vector.load %arg6[%c2_113, %c5_114] : memref<6x16xf32, #tpu.memory_space<vmem>>, vector<1x11xf32>
    %179 = vector.broadcast %31 : vector<3x1xf32> to vector<3x11xf32>
    %180 = vector.broadcast %178 : vector<1x11xf32> to vector<3x11xf32>
    %181 = arith.mulf %179, %180 : vector<3x11xf32>
    %182 = arith.addf %177, %181 : vector<3x11xf32>
    %c3_115 = arith.constant 3 : index
    %c0_116 = arith.constant 0 : index
    %183 = vector.load %arg6[%c3_115, %c0_116] : memref<6x16xf32, #tpu.memory_space<vmem>>, vector<1x11xf32>
    %184 = vector.broadcast %32 : vector<3x1xf32> to vector<3x11xf32>
    %185 = vector.broadcast %183 : vector<1x11xf32> to vector<3x11xf32>
    %186 = arith.mulf %184, %185 : vector<3x11xf32>
    %187 = arith.addf %182, %186 : vector<3x11xf32>
    %c3_117 = arith.constant 3 : index
    %c1_118 = arith.constant 1 : index
    %188 = vector.load %arg6[%c3_117, %c1_118] : memref<6x16xf32, #tpu.memory_space<vmem>>, vector<1x11xf32>
    %189 = vector.broadcast %33 : vector<3x1xf32> to vector<3x11xf32>
    %190 = vector.broadcast %188 : vector<1x11xf32> to vector<3x11xf32>
    %191 = arith.mulf %189, %190 : vector<3x11xf32>
    %192 = arith.addf %187, %191 : vector<3x11xf32>
    %c3_119 = arith.constant 3 : index
    %c4_120 = arith.constant 4 : index
    %193 = vector.load %arg6[%c3_119, %c4_120] : memref<6x16xf32, #tpu.memory_space<vmem>>, vector<1x11xf32>
    %194 = vector.broadcast %34 : vector<3x1xf32> to vector<3x11xf32>
    %195 = vector.broadcast %193 : vector<1x11xf32> to vector<3x11xf32>
    %196 = arith.mulf %194, %195 : vector<3x11xf32>
    %197 = arith.addf %192, %196 : vector<3x11xf32>
    %c3_121 = arith.constant 3 : index
    %c5_122 = arith.constant 5 : index
    %198 = vector.load %arg6[%c3_121, %c5_122] : memref<6x16xf32, #tpu.memory_space<vmem>>, vector<1x11xf32>
    %199 = vector.broadcast %35 : vector<3x1xf32> to vector<3x11xf32>
    %200 = vector.broadcast %198 : vector<1x11xf32> to vector<3x11xf32>
    %201 = arith.mulf %199, %200 : vector<3x11xf32>
    %202 = arith.addf %197, %201 : vector<3x11xf32>
    %c4_123 = arith.constant 4 : index
    %c0_124 = arith.constant 0 : index
    %203 = vector.load %arg6[%c4_123, %c0_124] : memref<6x16xf32, #tpu.memory_space<vmem>>, vector<1x11xf32>
    %204 = vector.broadcast %36 : vector<3x1xf32> to vector<3x11xf32>
    %205 = vector.broadcast %203 : vector<1x11xf32> to vector<3x11xf32>
    %206 = arith.mulf %204, %205 : vector<3x11xf32>
    %207 = arith.addf %202, %206 : vector<3x11xf32>
    %c4_125 = arith.constant 4 : index
    %c1_126 = arith.constant 1 : index
    %208 = vector.load %arg6[%c4_125, %c1_126] : memref<6x16xf32, #tpu.memory_space<vmem>>, vector<1x11xf32>
    %209 = vector.broadcast %37 : vector<3x1xf32> to vector<3x11xf32>
    %210 = vector.broadcast %208 : vector<1x11xf32> to vector<3x11xf32>
    %211 = arith.mulf %209, %210 : vector<3x11xf32>
    %212 = arith.addf %207, %211 : vector<3x11xf32>
    %c4_127 = arith.constant 4 : index
    %c4_128 = arith.constant 4 : index
    %213 = vector.load %arg6[%c4_127, %c4_128] : memref<6x16xf32, #tpu.memory_space<vmem>>, vector<1x11xf32>
    %214 = vector.broadcast %38 : vector<3x1xf32> to vector<3x11xf32>
    %215 = vector.broadcast %213 : vector<1x11xf32> to vector<3x11xf32>
    %216 = arith.mulf %214, %215 : vector<3x11xf32>
    %217 = arith.addf %212, %216 : vector<3x11xf32>
    %c4_129 = arith.constant 4 : index
    %c5_130 = arith.constant 5 : index
    %218 = vector.load %arg6[%c4_129, %c5_130] : memref<6x16xf32, #tpu.memory_space<vmem>>, vector<1x11xf32>
    %219 = vector.broadcast %39 : vector<3x1xf32> to vector<3x11xf32>
    %220 = vector.broadcast %218 : vector<1x11xf32> to vector<3x11xf32>
    %221 = arith.mulf %219, %220 : vector<3x11xf32>
    %222 = arith.addf %217, %221 : vector<3x11xf32>
    %c5_131 = arith.constant 5 : index
    %c0_132 = arith.constant 0 : index
    %223 = vector.load %arg6[%c5_131, %c0_132] : memref<6x16xf32, #tpu.memory_space<vmem>>, vector<1x11xf32>
    %224 = vector.broadcast %40 : vector<3x1xf32> to vector<3x11xf32>
    %225 = vector.broadcast %223 : vector<1x11xf32> to vector<3x11xf32>
    %226 = arith.mulf %224, %225 : vector<3x11xf32>
    %227 = arith.addf %222, %226 : vector<3x11xf32>
    %c5_133 = arith.constant 5 : index
    %c1_134 = arith.constant 1 : index
    %228 = vector.load %arg6[%c5_133, %c1_134] : memref<6x16xf32, #tpu.memory_space<vmem>>, vector<1x11xf32>
    %229 = vector.broadcast %41 : vector<3x1xf32> to vector<3x11xf32>
    %230 = vector.broadcast %228 : vector<1x11xf32> to vector<3x11xf32>
    %231 = arith.mulf %229, %230 : vector<3x11xf32>
    %232 = arith.addf %227, %231 : vector<3x11xf32>
    %c5_135 = arith.constant 5 : index
    %c4_136 = arith.constant 4 : index
    %233 = vector.load %arg6[%c5_135, %c4_136] : memref<6x16xf32, #tpu.memory_space<vmem>>, vector<1x11xf32>
    %234 = vector.broadcast %42 : vector<3x1xf32> to vector<3x11xf32>
    %235 = vector.broadcast %233 : vector<1x11xf32> to vector<3x11xf32>
    %236 = arith.mulf %234, %235 : vector<3x11xf32>
    %237 = arith.addf %232, %236 : vector<3x11xf32>
    %c5_137 = arith.constant 5 : index
    %c5_138 = arith.constant 5 : index
    %238 = vector.load %arg6[%c5_137, %c5_138] : memref<6x16xf32, #tpu.memory_space<vmem>>, vector<1x11xf32>
    %239 = vector.broadcast %43 : vector<3x1xf32> to vector<3x11xf32>
    %240 = vector.broadcast %238 : vector<1x11xf32> to vector<3x11xf32>
    %241 = arith.mulf %239, %240 : vector<3x11xf32>
    %242 = arith.addf %237, %241 : vector<3x11xf32>
    %c0_139 = arith.constant 0 : index
    %c0_140 = arith.constant 0 : index
    %243 = vector.load %arg0[%c0_139, %c0_140] : memref<6x16xf32, #tpu.memory_space<vmem>>, vector<3x16xf32>
    %244 = vector.broadcast %5 : vector<3x1xf32> to vector<3x16xf32>
    %245 = arith.addf %243, %244 : vector<3x16xf32>
    %c0_141 = arith.constant 0 : index
    %c0_142 = arith.constant 0 : index
    %246 = vector.load %arg5[%c0_141, %c0_142] : memref<6x16xf32, #tpu.memory_space<vmem>>, vector<3x16xf32>
    tpu.vector_store %arg5[%c0_141, %c0_142], %245 {strides = array<i32>} : memref<6x16xf32, #tpu.memory_space<vmem>>, vector<3x16xf32>,
    %c0_143 = arith.constant 0 : index
    %c5_144 = arith.constant 5 : index
    %247 = vector.load %arg0[%c0_143, %c5_144] : memref<6x16xf32, #tpu.memory_space<vmem>>, vector<3x1xf32>
    %248 = vector.extract_strided_slice %242 {offsets = [0, 0], sizes = [3, 1], strides = [1, 1]} : vector<3x11xf32> to vector<3x1xf32>
    %249 = arith.addf %1, %248 : vector<3x1xf32>
    %cst_145 = arith.constant 0.000000e+00 : f32
    %250 = vector.broadcast %cst_145 : f32 to vector<3x1xf32>
    %251 = arith.maximumf %249, %250 : vector<3x1xf32>
    %252 = arith.addf %247, %251 : vector<3x1xf32>
    %c0_146 = arith.constant 0 : index
    %c5_147 = arith.constant 5 : index
    %253 = vector.load %arg5[%c0_146, %c5_147] : memref<6x16xf32, #tpu.memory_space<vmem>>, vector<3x1xf32>
    tpu.vector_store %arg5[%c0_146, %c5_147], %252 {strides = array<i32>} : memref<6x16xf32, #tpu.memory_space<vmem>>, vector<3x1xf32>,
    %c0_148 = arith.constant 0 : index
    %c6_149 = arith.constant 6 : index
    %254 = vector.load %arg0[%c0_148, %c6_149] : memref<6x16xf32, #tpu.memory_space<vmem>>, vector<3x1xf32>
    %255 = vector.extract_strided_slice %242 {offsets = [0, 2], sizes = [3, 1], strides = [1, 1]} : vector<3x11xf32> to vector<3x1xf32>
    %256 = arith.addf %1, %255 : vector<3x1xf32>
    %cst_150 = arith.constant 0.000000e+00 : f32
    %257 = vector.broadcast %cst_150 : f32 to vector<3x1xf32>
    %258 = arith.maximumf %256, %257 : vector<3x1xf32>
    %259 = arith.addf %254, %258 : vector<3x1xf32>
    %c0_151 = arith.constant 0 : index
    %c6_152 = arith.constant 6 : index
    %260 = vector.load %arg5[%c0_151, %c6_152] : memref<6x16xf32, #tpu.memory_space<vmem>>, vector<3x1xf32>
    tpu.vector_store %arg5[%c0_151, %c6_152], %259 {strides = array<i32>} : memref<6x16xf32, #tpu.memory_space<vmem>>, vector<3x1xf32>,
    %c0_153 = arith.constant 0 : index
    %c9_154 = arith.constant 9 : index
    %261 = vector.load %arg0[%c0_153, %c9_154] : memref<6x16xf32, #tpu.memory_space<vmem>>, vector<3x1xf32>
    %262 = vector.extract_strided_slice %242 {offsets = [0, 8], sizes = [3, 1], strides = [1, 1]} : vector<3x11xf32> to vector<3x1xf32>
    %263 = arith.addf %1, %262 : vector<3x1xf32>
    %cst_155 = arith.constant 0.000000e+00 : f32
    %264 = vector.broadcast %cst_155 : f32 to vector<3x1xf32>
    %265 = arith.maximumf %263, %264 : vector<3x1xf32>
    %266 = arith.addf %261, %265 : vector<3x1xf32>
    %c0_156 = arith.constant 0 : index
    %c9_157 = arith.constant 9 : index
    %267 = vector.load %arg5[%c0_156, %c9_157] : memref<6x16xf32, #tpu.memory_space<vmem>>, vector<3x1xf32>
    tpu.vector_store %arg5[%c0_156, %c9_157], %266 {strides = array<i32>} : memref<6x16xf32, #tpu.memory_space<vmem>>, vector<3x1xf32>,
    %c0_158 = arith.constant 0 : index
    %c10_159 = arith.constant 10 : index
    %268 = vector.load %arg0[%c0_158, %c10_159] : memref<6x16xf32, #tpu.memory_space<vmem>>, vector<3x1xf32>
    %269 = vector.extract_strided_slice %242 {offsets = [0, 10], sizes = [3, 1], strides = [1, 1]} : vector<3x11xf32> to vector<3x1xf32>
    %270 = arith.addf %1, %269 : vector<3x1xf32>
    %cst_160 = arith.constant 0.000000e+00 : f32
    %271 = vector.broadcast %cst_160 : f32 to vector<3x1xf32>
    %272 = arith.maximumf %270, %271 : vector<3x1xf32>
    %273 = arith.addf %268, %272 : vector<3x1xf32>
    %c0_161 = arith.constant 0 : index
    %c10_162 = arith.constant 10 : index
    %274 = vector.load %arg5[%c0_161, %c10_162] : memref<6x16xf32, #tpu.memory_space<vmem>>, vector<3x1xf32>
    tpu.vector_store %arg5[%c0_161, %c10_162], %273 {strides = array<i32>} : memref<6x16xf32, #tpu.memory_space<vmem>>, vector<3x1xf32>,
    %c3_163 = arith.constant 3 : index
    %c0_164 = arith.constant 0 : index
    %275 = vector.load %arg0[%c3_163, %c0_164] : memref<6x16xf32, #tpu.memory_space<vmem>>, vector<1x11xf32>
    %276 = vector.broadcast %8 : vector<6x1xf32> to vector<6x11xf32>
    %277 = vector.broadcast %275 : vector<1x11xf32> to vector<6x11xf32>
    %278 = arith.mulf %276, %277 : vector<6x11xf32>
    %c3_165 = arith.constant 3 : index
    %c1_166 = arith.constant 1 : index
    %279 = vector.load %arg0[%c3_165, %c1_166] : memref<6x16xf32, #tpu.memory_space<vmem>>, vector<1x11xf32>
    %280 = vector.broadcast %9 : vector<6x1xf32> to vector<6x11xf32>
    %281 = vector.broadcast %279 : vector<1x11xf32> to vector<6x11xf32>
    %282 = arith.mulf %280, %281 : vector<6x11xf32>
    %283 = arith.addf %278, %282 : vector<6x11xf32>
    %c3_167 = arith.constant 3 : index
    %c4_168 = arith.constant 4 : index
    %284 = vector.load %arg0[%c3_167, %c4_168] : memref<6x16xf32, #tpu.memory_space<vmem>>, vector<1x11xf32>
    %285 = vector.broadcast %10 : vector<6x1xf32> to vector<6x11xf32>
    %286 = vector.broadcast %284 : vector<1x11xf32> to vector<6x11xf32>
    %287 = arith.mulf %285, %286 : vector<6x11xf32>
    %288 = arith.addf %283, %287 : vector<6x11xf32>
    %c3_169 = arith.constant 3 : index
    %c5_170 = arith.constant 5 : index
    %289 = vector.load %arg0[%c3_169, %c5_170] : memref<6x16xf32, #tpu.memory_space<vmem>>, vector<1x11xf32>
    %290 = vector.broadcast %11 : vector<6x1xf32> to vector<6x11xf32>
    %291 = vector.broadcast %289 : vector<1x11xf32> to vector<6x11xf32>
    %292 = arith.mulf %290, %291 : vector<6x11xf32>
    %293 = arith.addf %288, %292 : vector<6x11xf32>
    %c4_171 = arith.constant 4 : index
    %c0_172 = arith.constant 0 : index
    %294 = vector.load %arg0[%c4_171, %c0_172] : memref<6x16xf32, #tpu.memory_space<vmem>>, vector<1x11xf32>
    %295 = vector.broadcast %12 : vector<6x1xf32> to vector<6x11xf32>
    %296 = vector.broadcast %294 : vector<1x11xf32> to vector<6x11xf32>
    %297 = arith.mulf %295, %296 : vector<6x11xf32>
    %298 = arith.addf %293, %297 : vector<6x11xf32>
    %c4_173 = arith.constant 4 : index
    %c1_174 = arith.constant 1 : index
    %299 = vector.load %arg0[%c4_173, %c1_174] : memref<6x16xf32, #tpu.memory_space<vmem>>, vector<1x11xf32>
    %300 = vector.broadcast %13 : vector<6x1xf32> to vector<6x11xf32>
    %301 = vector.broadcast %299 : vector<1x11xf32> to vector<6x11xf32>
    %302 = arith.mulf %300, %301 : vector<6x11xf32>
    %303 = arith.addf %298, %302 : vector<6x11xf32>
    %c4_175 = arith.constant 4 : index
    %c4_176 = arith.constant 4 : index
    %304 = vector.load %arg0[%c4_175, %c4_176] : memref<6x16xf32, #tpu.memory_space<vmem>>, vector<1x11xf32>
    %305 = vector.broadcast %14 : vector<6x1xf32> to vector<6x11xf32>
    %306 = vector.broadcast %304 : vector<1x11xf32> to vector<6x11xf32>
    %307 = arith.mulf %305, %306 : vector<6x11xf32>
    %308 = arith.addf %303, %307 : vector<6x11xf32>
    %c4_177 = arith.constant 4 : index
    %c5_178 = arith.constant 5 : index
    %309 = vector.load %arg0[%c4_177, %c5_178] : memref<6x16xf32, #tpu.memory_space<vmem>>, vector<1x11xf32>
    %310 = vector.broadcast %15 : vector<6x1xf32> to vector<6x11xf32>
    %311 = vector.broadcast %309 : vector<1x11xf32> to vector<6x11xf32>
    %312 = arith.mulf %310, %311 : vector<6x11xf32>
    %313 = arith.addf %308, %312 : vector<6x11xf32>
    %c5_179 = arith.constant 5 : index
    %c0_180 = arith.constant 0 : index
    %314 = vector.load %arg0[%c5_179, %c0_180] : memref<6x16xf32, #tpu.memory_space<vmem>>, vector<1x11xf32>
    %315 = vector.broadcast %16 : vector<6x1xf32> to vector<6x11xf32>
    %316 = vector.broadcast %314 : vector<1x11xf32> to vector<6x11xf32>
    %317 = arith.mulf %315, %316 : vector<6x11xf32>
    %318 = arith.addf %313, %317 : vector<6x11xf32>
    %c5_181 = arith.constant 5 : index
    %c1_182 = arith.constant 1 : index
    %319 = vector.load %arg0[%c5_181, %c1_182] : memref<6x16xf32, #tpu.memory_space<vmem>>, vector<1x11xf32>
    %320 = vector.broadcast %17 : vector<6x1xf32> to vector<6x11xf32>
    %321 = vector.broadcast %319 : vector<1x11xf32> to vector<6x11xf32>
    %322 = arith.mulf %320, %321 : vector<6x11xf32>
    %323 = arith.addf %318, %322 : vector<6x11xf32>
    %c5_183 = arith.constant 5 : index
    %c4_184 = arith.constant 4 : index
    %324 = vector.load %arg0[%c5_183, %c4_184] : memref<6x16xf32, #tpu.memory_space<vmem>>, vector<1x11xf32>
    %325 = vector.broadcast %18 : vector<6x1xf32> to vector<6x11xf32>
    %326 = vector.broadcast %324 : vector<1x11xf32> to vector<6x11xf32>
    %327 = arith.mulf %325, %326 : vector<6x11xf32>
    %328 = arith.addf %323, %327 : vector<6x11xf32>
    %c5_185 = arith.constant 5 : index
    %c5_186 = arith.constant 5 : index
    %329 = vector.load %arg0[%c5_185, %c5_186] : memref<6x16xf32, #tpu.memory_space<vmem>>, vector<1x11xf32>
    %330 = vector.broadcast %19 : vector<6x1xf32> to vector<6x11xf32>
    %331 = vector.broadcast %329 : vector<1x11xf32> to vector<6x11xf32>
    %332 = arith.mulf %330, %331 : vector<6x11xf32>
    %333 = arith.addf %328, %332 : vector<6x11xf32>
    %c0_187 = arith.constant 0 : index
    %c0_188 = arith.constant 0 : index
    %334 = vector.load %arg6[%c0_187, %c0_188] : memref<6x16xf32, #tpu.memory_space<vmem>>, vector<6x16xf32>
    tpu.vector_store %arg6[%c0_187, %c0_188], %7 {strides = array<i32>} : memref<6x16xf32, #tpu.memory_space<vmem>>, vector<6x16xf32>,
    %335 = vector.extract_strided_slice %333 {offsets = [0, 0], sizes = [6, 1], strides = [1, 1]} : vector<6x11xf32> to vector<6x1xf32>
    %336 = arith.addf %0, %335 : vector<6x1xf32>
    %cst_189 = arith.constant 0.000000e+00 : f32
    %337 = vector.broadcast %cst_189 : f32 to vector<6x1xf32>
    %338 = arith.maximumf %336, %337 : vector<6x1xf32>
    %c0_190 = arith.constant 0 : index
    %c5_191 = arith.constant 5 : index
    %339 = vector.load %arg6[%c0_190, %c5_191] : memref<6x16xf32, #tpu.memory_space<vmem>>, vector<6x1xf32>
    tpu.vector_store %arg6[%c0_190, %c5_191], %338 {strides = array<i32>} : memref<6x16xf32, #tpu.memory_space<vmem>>, vector<6x1xf32>,
    %340 = vector.extract_strided_slice %333 {offsets = [0, 2], sizes = [6, 1], strides = [1, 1]} : vector<6x11xf32> to vector<6x1xf32>
    %341 = arith.addf %0, %340 : vector<6x1xf32>
    %cst_192 = arith.constant 0.000000e+00 : f32
    %342 = vector.broadcast %cst_192 : f32 to vector<6x1xf32>
    %343 = arith.maximumf %341, %342 : vector<6x1xf32>
    %c0_193 = arith.constant 0 : index
    %c6_194 = arith.constant 6 : index
    %344 = vector.load %arg6[%c0_193, %c6_194] : memref<6x16xf32, #tpu.memory_space<vmem>>, vector<6x1xf32>
    tpu.vector_store %arg6[%c0_193, %c6_194], %343 {strides = array<i32>} : memref<6x16xf32, #tpu.memory_space<vmem>>, vector<6x1xf32>,
    %345 = vector.extract_strided_slice %333 {offsets = [0, 8], sizes = [6, 1], strides = [1, 1]} : vector<6x11xf32> to vector<6x1xf32>
    %346 = arith.addf %0, %345 : vector<6x1xf32>
    %cst_195 = arith.constant 0.000000e+00 : f32
    %347 = vector.broadcast %cst_195 : f32 to vector<6x1xf32>
    %348 = arith.maximumf %346, %347 : vector<6x1xf32>
    %c0_196 = arith.constant 0 : index
    %c9_197 = arith.constant 9 : index
    %349 = vector.load %arg6[%c0_196, %c9_197] : memref<6x16xf32, #tpu.memory_space<vmem>>, vector<6x1xf32>
    tpu.vector_store %arg6[%c0_196, %c9_197], %348 {strides = array<i32>} : memref<6x16xf32, #tpu.memory_space<vmem>>, vector<6x1xf32>,
    %350 = vector.extract_strided_slice %333 {offsets = [0, 10], sizes = [6, 1], strides = [1, 1]} : vector<6x11xf32> to vector<6x1xf32>
    %351 = arith.addf %0, %350 : vector<6x1xf32>
    %cst_198 = arith.constant 0.000000e+00 : f32
    %352 = vector.broadcast %cst_198 : f32 to vector<6x1xf32>
    %353 = arith.maximumf %351, %352 : vector<6x1xf32>
    %c0_199 = arith.constant 0 : index
    %c10_200 = arith.constant 10 : index
    %354 = vector.load %arg6[%c0_199, %c10_200] : memref<6x16xf32, #tpu.memory_space<vmem>>, vector<6x1xf32>
    tpu.vector_store %arg6[%c0_199, %c10_200], %353 {strides = array<i32>} : memref<6x16xf32, #tpu.memory_space<vmem>>, vector<6x1xf32>,
    %c0_201 = arith.constant 0 : index
    %c0_202 = arith.constant 0 : index
    %355 = vector.load %arg6[%c0_201, %c0_202] : memref<6x16xf32, #tpu.memory_space<vmem>>, vector<1x11xf32>
    %356 = vector.broadcast %20 : vector<3x1xf32> to vector<3x11xf32>
    %357 = vector.broadcast %355 : vector<1x11xf32> to vector<3x11xf32>
    %358 = arith.mulf %356, %357 : vector<3x11xf32>
    %c0_203 = arith.constant 0 : index
    %c1_204 = arith.constant 1 : index
    %359 = vector.load %arg6[%c0_203, %c1_204] : memref<6x16xf32, #tpu.memory_space<vmem>>, vector<1x11xf32>
    %360 = vector.broadcast %21 : vector<3x1xf32> to vector<3x11xf32>
    %361 = vector.broadcast %359 : vector<1x11xf32> to vector<3x11xf32>
    %362 = arith.mulf %360, %361 : vector<3x11xf32>
    %363 = arith.addf %358, %362 : vector<3x11xf32>
    %c0_205 = arith.constant 0 : index
    %c4_206 = arith.constant 4 : index
    %364 = vector.load %arg6[%c0_205, %c4_206] : memref<6x16xf32, #tpu.memory_space<vmem>>, vector<1x11xf32>
    %365 = vector.broadcast %22 : vector<3x1xf32> to vector<3x11xf32>
    %366 = vector.broadcast %364 : vector<1x11xf32> to vector<3x11xf32>
    %367 = arith.mulf %365, %366 : vector<3x11xf32>
    %368 = arith.addf %363, %367 : vector<3x11xf32>
    %c0_207 = arith.constant 0 : index
    %c5_208 = arith.constant 5 : index
    %369 = vector.load %arg6[%c0_207, %c5_208] : memref<6x16xf32, #tpu.memory_space<vmem>>, vector<1x11xf32>
    %370 = vector.broadcast %23 : vector<3x1xf32> to vector<3x11xf32>
    %371 = vector.broadcast %369 : vector<1x11xf32> to vector<3x11xf32>
    %372 = arith.mulf %370, %371 : vector<3x11xf32>
    %373 = arith.addf %368, %372 : vector<3x11xf32>
    %c1_209 = arith.constant 1 : index
    %c0_210 = arith.constant 0 : index
    %374 = vector.load %arg6[%c1_209, %c0_210] : memref<6x16xf32, #tpu.memory_space<vmem>>, vector<1x11xf32>
    %375 = vector.broadcast %24 : vector<3x1xf32> to vector<3x11xf32>
    %376 = vector.broadcast %374 : vector<1x11xf32> to vector<3x11xf32>
    %377 = arith.mulf %375, %376 : vector<3x11xf32>
    %378 = arith.addf %373, %377 : vector<3x11xf32>
    %c1_211 = arith.constant 1 : index
    %c1_212 = arith.constant 1 : index
    %379 = vector.load %arg6[%c1_211, %c1_212] : memref<6x16xf32, #tpu.memory_space<vmem>>, vector<1x11xf32>
    %380 = vector.broadcast %25 : vector<3x1xf32> to vector<3x11xf32>
    %381 = vector.broadcast %379 : vector<1x11xf32> to vector<3x11xf32>
    %382 = arith.mulf %380, %381 : vector<3x11xf32>
    %383 = arith.addf %378, %382 : vector<3x11xf32>
    %c1_213 = arith.constant 1 : index
    %c4_214 = arith.constant 4 : index
    %384 = vector.load %arg6[%c1_213, %c4_214] : memref<6x16xf32, #tpu.memory_space<vmem>>, vector<1x11xf32>
    %385 = vector.broadcast %26 : vector<3x1xf32> to vector<3x11xf32>
    %386 = vector.broadcast %384 : vector<1x11xf32> to vector<3x11xf32>
    %387 = arith.mulf %385, %386 : vector<3x11xf32>
    %388 = arith.addf %383, %387 : vector<3x11xf32>
    %c1_215 = arith.constant 1 : index
    %c5_216 = arith.constant 5 : index
    %389 = vector.load %arg6[%c1_215, %c5_216] : memref<6x16xf32, #tpu.memory_space<vmem>>, vector<1x11xf32>
    %390 = vector.broadcast %27 : vector<3x1xf32> to vector<3x11xf32>
    %391 = vector.broadcast %389 : vector<1x11xf32> to vector<3x11xf32>
    %392 = arith.mulf %390, %391 : vector<3x11xf32>
    %393 = arith.addf %388, %392 : vector<3x11xf32>
    %c2_217 = arith.constant 2 : index
    %c0_218 = arith.constant 0 : index
    %394 = vector.load %arg6[%c2_217, %c0_218] : memref<6x16xf32, #tpu.memory_space<vmem>>, vector<1x11xf32>
    %395 = vector.broadcast %28 : vector<3x1xf32> to vector<3x11xf32>
    %396 = vector.broadcast %394 : vector<1x11xf32> to vector<3x11xf32>
    %397 = arith.mulf %395, %396 : vector<3x11xf32>
    %398 = arith.addf %393, %397 : vector<3x11xf32>
    %c2_219 = arith.constant 2 : index
    %c1_220 = arith.constant 1 : index
    %399 = vector.load %arg6[%c2_219, %c1_220] : memref<6x16xf32, #tpu.memory_space<vmem>>, vector<1x11xf32>
    %400 = vector.broadcast %29 : vector<3x1xf32> to vector<3x11xf32>
    %401 = vector.broadcast %399 : vector<1x11xf32> to vector<3x11xf32>
    %402 = arith.mulf %400, %401 : vector<3x11xf32>
    %403 = arith.addf %398, %402 : vector<3x11xf32>
    %c2_221 = arith.constant 2 : index
    %c4_222 = arith.constant 4 : index
    %404 = vector.load %arg6[%c2_221, %c4_222] : memref<6x16xf32, #tpu.memory_space<vmem>>, vector<1x11xf32>
    %405 = vector.broadcast %30 : vector<3x1xf32> to vector<3x11xf32>
    %406 = vector.broadcast %404 : vector<1x11xf32> to vector<3x11xf32>
    %407 = arith.mulf %405, %406 : vector<3x11xf32>
    %408 = arith.addf %403, %407 : vector<3x11xf32>
    %c2_223 = arith.constant 2 : index
    %c5_224 = arith.constant 5 : index
    %409 = vector.load %arg6[%c2_223, %c5_224] : memref<6x16xf32, #tpu.memory_space<vmem>>, vector<1x11xf32>
    %410 = vector.broadcast %31 : vector<3x1xf32> to vector<3x11xf32>
    %411 = vector.broadcast %409 : vector<1x11xf32> to vector<3x11xf32>
    %412 = arith.mulf %410, %411 : vector<3x11xf32>
    %413 = arith.addf %408, %412 : vector<3x11xf32>
    %c3_225 = arith.constant 3 : index
    %c0_226 = arith.constant 0 : index
    %414 = vector.load %arg6[%c3_225, %c0_226] : memref<6x16xf32, #tpu.memory_space<vmem>>, vector<1x11xf32>
    %415 = vector.broadcast %32 : vector<3x1xf32> to vector<3x11xf32>
    %416 = vector.broadcast %414 : vector<1x11xf32> to vector<3x11xf32>
    %417 = arith.mulf %415, %416 : vector<3x11xf32>
    %418 = arith.addf %413, %417 : vector<3x11xf32>
    %c3_227 = arith.constant 3 : index
    %c1_228 = arith.constant 1 : index
    %419 = vector.load %arg6[%c3_227, %c1_228] : memref<6x16xf32, #tpu.memory_space<vmem>>, vector<1x11xf32>
    %420 = vector.broadcast %33 : vector<3x1xf32> to vector<3x11xf32>
    %421 = vector.broadcast %419 : vector<1x11xf32> to vector<3x11xf32>
    %422 = arith.mulf %420, %421 : vector<3x11xf32>
    %423 = arith.addf %418, %422 : vector<3x11xf32>
    %c3_229 = arith.constant 3 : index
    %c4_230 = arith.constant 4 : index
    %424 = vector.load %arg6[%c3_229, %c4_230] : memref<6x16xf32, #tpu.memory_space<vmem>>, vector<1x11xf32>
    %425 = vector.broadcast %34 : vector<3x1xf32> to vector<3x11xf32>
    %426 = vector.broadcast %424 : vector<1x11xf32> to vector<3x11xf32>
    %427 = arith.mulf %425, %426 : vector<3x11xf32>
    %428 = arith.addf %423, %427 : vector<3x11xf32>
    %c3_231 = arith.constant 3 : index
    %c5_232 = arith.constant 5 : index
    %429 = vector.load %arg6[%c3_231, %c5_232] : memref<6x16xf32, #tpu.memory_space<vmem>>, vector<1x11xf32>
    %430 = vector.broadcast %35 : vector<3x1xf32> to vector<3x11xf32>
    %431 = vector.broadcast %429 : vector<1x11xf32> to vector<3x11xf32>
    %432 = arith.mulf %430, %431 : vector<3x11xf32>
    %433 = arith.addf %428, %432 : vector<3x11xf32>
    %c4_233 = arith.constant 4 : index
    %c0_234 = arith.constant 0 : index
    %434 = vector.load %arg6[%c4_233, %c0_234] : memref<6x16xf32, #tpu.memory_space<vmem>>, vector<1x11xf32>
    %435 = vector.broadcast %36 : vector<3x1xf32> to vector<3x11xf32>
    %436 = vector.broadcast %434 : vector<1x11xf32> to vector<3x11xf32>
    %437 = arith.mulf %435, %436 : vector<3x11xf32>
    %438 = arith.addf %433, %437 : vector<3x11xf32>
    %c4_235 = arith.constant 4 : index
    %c1_236 = arith.constant 1 : index
    %439 = vector.load %arg6[%c4_235, %c1_236] : memref<6x16xf32, #tpu.memory_space<vmem>>, vector<1x11xf32>
    %440 = vector.broadcast %37 : vector<3x1xf32> to vector<3x11xf32>
    %441 = vector.broadcast %439 : vector<1x11xf32> to vector<3x11xf32>
    %442 = arith.mulf %440, %441 : vector<3x11xf32>
    %443 = arith.addf %438, %442 : vector<3x11xf32>
    %c4_237 = arith.constant 4 : index
    %c4_238 = arith.constant 4 : index
    %444 = vector.load %arg6[%c4_237, %c4_238] : memref<6x16xf32, #tpu.memory_space<vmem>>, vector<1x11xf32>
    %445 = vector.broadcast %38 : vector<3x1xf32> to vector<3x11xf32>
    %446 = vector.broadcast %444 : vector<1x11xf32> to vector<3x11xf32>
    %447 = arith.mulf %445, %446 : vector<3x11xf32>
    %448 = arith.addf %443, %447 : vector<3x11xf32>
    %c4_239 = arith.constant 4 : index
    %c5_240 = arith.constant 5 : index
    %449 = vector.load %arg6[%c4_239, %c5_240] : memref<6x16xf32, #tpu.memory_space<vmem>>, vector<1x11xf32>
    %450 = vector.broadcast %39 : vector<3x1xf32> to vector<3x11xf32>
    %451 = vector.broadcast %449 : vector<1x11xf32> to vector<3x11xf32>
    %452 = arith.mulf %450, %451 : vector<3x11xf32>
    %453 = arith.addf %448, %452 : vector<3x11xf32>
    %c5_241 = arith.constant 5 : index
    %c0_242 = arith.constant 0 : index
    %454 = vector.load %arg6[%c5_241, %c0_242] : memref<6x16xf32, #tpu.memory_space<vmem>>, vector<1x11xf32>
    %455 = vector.broadcast %40 : vector<3x1xf32> to vector<3x11xf32>
    %456 = vector.broadcast %454 : vector<1x11xf32> to vector<3x11xf32>
    %457 = arith.mulf %455, %456 : vector<3x11xf32>
    %458 = arith.addf %453, %457 : vector<3x11xf32>
    %c5_243 = arith.constant 5 : index
    %c1_244 = arith.constant 1 : index
    %459 = vector.load %arg6[%c5_243, %c1_244] : memref<6x16xf32, #tpu.memory_space<vmem>>, vector<1x11xf32>
    %460 = vector.broadcast %41 : vector<3x1xf32> to vector<3x11xf32>
    %461 = vector.broadcast %459 : vector<1x11xf32> to vector<3x11xf32>
    %462 = arith.mulf %460, %461 : vector<3x11xf32>
    %463 = arith.addf %458, %462 : vector<3x11xf32>
    %c5_245 = arith.constant 5 : index
    %c4_246 = arith.constant 4 : index
    %464 = vector.load %arg6[%c5_245, %c4_246] : memref<6x16xf32, #tpu.memory_space<vmem>>, vector<1x11xf32>
    %465 = vector.broadcast %42 : vector<3x1xf32> to vector<3x11xf32>
    %466 = vector.broadcast %464 : vector<1x11xf32> to vector<3x11xf32>
    %467 = arith.mulf %465, %466 : vector<3x11xf32>
    %468 = arith.addf %463, %467 : vector<3x11xf32>
    %c5_247 = arith.constant 5 : index
    %c5_248 = arith.constant 5 : index
    %469 = vector.load %arg6[%c5_247, %c5_248] : memref<6x16xf32, #tpu.memory_space<vmem>>, vector<1x11xf32>
    %470 = vector.broadcast %43 : vector<3x1xf32> to vector<3x11xf32>
    %471 = vector.broadcast %469 : vector<1x11xf32> to vector<3x11xf32>
    %472 = arith.mulf %470, %471 : vector<3x11xf32>
    %473 = arith.addf %468, %472 : vector<3x11xf32>
    %c3_249 = arith.constant 3 : index
    %c0_250 = arith.constant 0 : index
    %474 = vector.load %arg0[%c3_249, %c0_250] : memref<6x16xf32, #tpu.memory_space<vmem>>, vector<3x16xf32>
    %475 = vector.broadcast %5 : vector<3x1xf32> to vector<3x16xf32>
    %476 = arith.addf %474, %475 : vector<3x16xf32>
    %c3_251 = arith.constant 3 : index
    %c0_252 = arith.constant 0 : index
    %477 = vector.load %arg5[%c3_251, %c0_252] : memref<6x16xf32, #tpu.memory_space<vmem>>, vector<3x16xf32>
    tpu.vector_store %arg5[%c3_251, %c0_252], %476 {strides = array<i32>} : memref<6x16xf32, #tpu.memory_space<vmem>>, vector<3x16xf32>,
    %c3_253 = arith.constant 3 : index
    %c5_254 = arith.constant 5 : index
    %478 = vector.load %arg0[%c3_253, %c5_254] : memref<6x16xf32, #tpu.memory_space<vmem>>, vector<3x1xf32>
    %479 = vector.extract_strided_slice %473 {offsets = [0, 0], sizes = [3, 1], strides = [1, 1]} : vector<3x11xf32> to vector<3x1xf32>
    %480 = arith.addf %1, %479 : vector<3x1xf32>
    %cst_255 = arith.constant 0.000000e+00 : f32
    %481 = vector.broadcast %cst_255 : f32 to vector<3x1xf32>
    %482 = arith.maximumf %480, %481 : vector<3x1xf32>
    %483 = arith.addf %478, %482 : vector<3x1xf32>
    %c3_256 = arith.constant 3 : index
    %c5_257 = arith.constant 5 : index
    %484 = vector.load %arg5[%c3_256, %c5_257] : memref<6x16xf32, #tpu.memory_space<vmem>>, vector<3x1xf32>
    tpu.vector_store %arg5[%c3_256, %c5_257], %483 {strides = array<i32>} : memref<6x16xf32, #tpu.memory_space<vmem>>, vector<3x1xf32>,
    %c3_258 = arith.constant 3 : index
    %c6_259 = arith.constant 6 : index
    %485 = vector.load %arg0[%c3_258, %c6_259] : memref<6x16xf32, #tpu.memory_space<vmem>>, vector<3x1xf32>
    %486 = vector.extract_strided_slice %473 {offsets = [0, 2], sizes = [3, 1], strides = [1, 1]} : vector<3x11xf32> to vector<3x1xf32>
    %487 = arith.addf %1, %486 : vector<3x1xf32>
    %cst_260 = arith.constant 0.000000e+00 : f32
    %488 = vector.broadcast %cst_260 : f32 to vector<3x1xf32>
    %489 = arith.maximumf %487, %488 : vector<3x1xf32>
    %490 = arith.addf %485, %489 : vector<3x1xf32>
    %c3_261 = arith.constant 3 : index
    %c6_262 = arith.constant 6 : index
    %491 = vector.load %arg5[%c3_261, %c6_262] : memref<6x16xf32, #tpu.memory_space<vmem>>, vector<3x1xf32>
    tpu.vector_store %arg5[%c3_261, %c6_262], %490 {strides = array<i32>} : memref<6x16xf32, #tpu.memory_space<vmem>>, vector<3x1xf32>,
    %c3_263 = arith.constant 3 : index
    %c9_264 = arith.constant 9 : index
    %492 = vector.load %arg0[%c3_263, %c9_264] : memref<6x16xf32, #tpu.memory_space<vmem>>, vector<3x1xf32>
    %493 = vector.extract_strided_slice %473 {offsets = [0, 8], sizes = [3, 1], strides = [1, 1]} : vector<3x11xf32> to vector<3x1xf32>
    %494 = arith.addf %1, %493 : vector<3x1xf32>
    %cst_265 = arith.constant 0.000000e+00 : f32
    %495 = vector.broadcast %cst_265 : f32 to vector<3x1xf32>
    %496 = arith.maximumf %494, %495 : vector<3x1xf32>
    %497 = arith.addf %492, %496 : vector<3x1xf32>
    %c3_266 = arith.constant 3 : index
    %c9_267 = arith.constant 9 : index
    %498 = vector.load %arg5[%c3_266, %c9_267] : memref<6x16xf32, #tpu.memory_space<vmem>>, vector<3x1xf32>
    tpu.vector_store %arg5[%c3_266, %c9_267], %497 {strides = array<i32>} : memref<6x16xf32, #tpu.memory_space<vmem>>, vector<3x1xf32>,
    %c3_268 = arith.constant 3 : index
    %c10_269 = arith.constant 10 : index
    %499 = vector.load %arg0[%c3_268, %c10_269] : memref<6x16xf32, #tpu.memory_space<vmem>>, vector<3x1xf32>
    %500 = vector.extract_strided_slice %473 {offsets = [0, 10], sizes = [3, 1], strides = [1, 1]} : vector<3x11xf32> to vector<3x1xf32>
    %501 = arith.addf %1, %500 : vector<3x1xf32>
    %cst_270 = arith.constant 0.000000e+00 : f32
    %502 = vector.broadcast %cst_270 : f32 to vector<3x1xf32>
    %503 = arith.maximumf %501, %502 : vector<3x1xf32>
    %504 = arith.addf %499, %503 : vector<3x1xf32>
    %c3_271 = arith.constant 3 : index
    %c10_272 = arith.constant 10 : index
    %505 = vector.load %arg5[%c3_271, %c10_272] : memref<6x16xf32, #tpu.memory_space<vmem>>, vector<3x1xf32>
    tpu.vector_store %arg5[%c3_271, %c10_272], %504 {strides = array<i32>} : memref<6x16xf32, #tpu.memory_space<vmem>>, vector<3x1xf32>,
    return
  }
}

</mosaic_0001>

<bundles_post_ra>
// kernel: skip_connection_forward.1
= control target key start
LH: loop header
LB: loop body
LE: loop exit
PB: predicated region body
PF: predicated region fallthrough
CT: control target
= control target key end

     0   :  { %v908_v0 = vmov 3   ;;  %v909_v1 = vmov 1   ;;  %v910_v3 = vmov 5   ;;  %v911_v4 = vmov 2   ;;  %s920_s21 = smov 127   ;;  %s921_s24 = smov 123   ;;  %s1316_s1 = inlined_call_operand.vmem [shape: f32[6,12], index: 1, kind: input, shape index: {}]   ;;  %s1317_s0 = inlined_call_operand.vmem [shape: f32[6,16], index: 0, kind: input, shape index: {}]   ;;  %s1318_s2 = inlined_call_operand.vmem [shape: f32[6,1], index: 2, kind: input, shape index: {}]   ;;  %s1319_s3 = inlined_call_operand.vmem [shape: f32[3,24], index: 3, kind: input, shape index: {}]   ;;  %s1320_s4 = inlined_call_operand.vmem [shape: f32[3,1], index: 4, kind: input, shape index: {}]   ;;  %s1321_s5 = inlined_call_operand.vmem [shape: f32[6,16], index: 5, kind: output, shape index: {}]  }
   0x1   :  { %872 = vset.pattern.permute.xlu1 %v908_v0  ;;  %870 = vset.pattern.permute.xlu0 %v909_v1  ;;  %v29_v2 = vld [vmem:[%s1316_s1] sm:$0x3f]  ;;  %v912_v5 = vmov 6   ;;  %v913_v6 = vmov 7   ;;  %v914_v7 = vmov 9   ;;  %v915_v8 = vmov 11  }
   0x2   :  { %63 = vperm.xlu1 %872, %v29_v2   ;;  %43 = vperm.xlu0 %870, %v29_v2   ;;  %v916_v9 = vmov 10   ;;  %v917_v10 = vmov 0   ;;  %v918_v11 = vmov 4   ;;  %v919_v12 = vmov 8   ;;  %v818_v13 = vld [vmem:[%s1317_s0] ss:$0 sm:$0xff] }
   0x3   :  { %v819_v20 = vld [vmem:[%s1317_s0 + $0x1] ss:$0 sm:$0xff]  ;;  %s922_s25 = smov 124   ;;  %v827_v27 = vld [vmem:[%s1317_s0 + $0x3] ss:$0 sm:$0xff]  ;;  %s923_s9 = smov 120  }
   0x4   :  { %v820_v28 = vld [vmem:[%s1317_s0 + $0x2] ss:$0 sm:$0xff]  ;;  %v828_v38 = vld [vmem:[%s1317_s0 + $0x4] ss:$0 sm:$0xff]  ;;  %v829_v41 = vld [vmem:[%s1317_s0 + $0x5] ss:$0 sm:$0xff] }
   0x5   :  { %s924_s10 = smov 126   ;;  %s925_s11 = smov 118   ;;  %vm154_vm0 = vcmask 128000   ;;  %vm162_vm1 = vcmask 46120   ;;  %vm174_vm2 = vcmask 54320   ;;  %vm185_vm3 = vcmask 78920  }
   0x6   :  { %873 = vset.pattern.permute.xlu1 %v910_v3  ;;  %871 = vset.pattern.permute.xlu0 %v911_v4  ;;  %s928_s16 = smov 9   ;;  %s930_s17 = smov 10   ;;  %vm196_vm4 = vcmask 87120   ;;  %vm451_vm5 = vcmask 124928   ;;  %vm461_vm6 = vcmask 43048   ;;  %vm475_vm7 = vcmask 51248  }
   0x7   :  { %84 = vperm.xlu1 %873, %v29_v2   ;;  %53 = vperm.xlu0 %871, %v29_v2   ;;  %vm488_vm8 = vcmask 75848   ;;  %vm501_vm9 = vcmask 84048  }
   0xb   :  { %874 = vset.pattern.permute.xlu1 %v912_v5  ;;  %875 = vset.pattern.permute.xlu0 %v913_v6 }
   0xc   :  { %94 = vperm.xlu1 %874, %v29_v2   ;;  %104 = vperm.xlu0 %875, %v29_v2  }
  0x10   :  { %876 = vset.pattern.permute.xlu1 %v914_v7  ;;  %878 = vset.pattern.permute.xlu0 %v915_v8 }
  0x11   :  { %125 = vperm.xlu1 %876, %v29_v2   ;;  %145 = vperm.xlu0 %878, %v29_v2  }
  0x15   :  { %877 = vset.pattern.permute.xlu1 %v916_v9  ;;  %883 = vset.pattern.permute.xlu0 %v909_v1 }
  0x16   :  { %135 = vperm.xlu1 %877, %v29_v2  }
  0x1a   :  { %879 = vset.pattern.permute.xlu1 %v917_v10 }
  0x1b   :  { %34 = vperm.xlu1 %879, %v29_v2  }
  0x1f   :  { %880 = vset.pattern.permute.xlu1 %v918_v11 }
  0x20   :  { %74 = vperm.xlu1 %880, %v29_v2  }
  0x24   :  { %881 = vset.pattern.permute.xlu1 %v919_v12 }
  0x25   :  { %115 = vperm.xlu1 %881, %v29_v2  }
  0x29   :  { %882 = vset.pattern.permute.xlu1 %v917_v10 }
  0x7d   :  { %v64_v14 = vpop.permute.xlu1 %63  ;;  %v44_v15 = vpop.permute.xlu0 %43 }
  0x7e   :  { %v46_v16 = vmul.f32 %v818_v13, %v44_v15  ;;  %v66_v17 = vmul.f32 %v818_v13, %v64_v14  ;;  %v509_v29 = vmul.f32 %v827_v27, %v44_v15  ;;  %v521_v35 = vmul.f32 %v827_v27, %v64_v14 }
  0x80   :  { %48 = vrot.lane.b32.xlu0 %v46_v16, %s920_s21 }
  0x82   :  { %v85_v18 = vpop.permute.xlu1 %84  ;;  %v54_v19 = vpop.permute.xlu0 %53 }
  0x83   :  { %v56_v21 = vmul.f32 %v818_v13, %v54_v19  ;;  %v87_v22 = vmul.f32 %v819_v20, %v85_v18  ;;  %v515_v31 = vmul.f32 %v827_v27, %v54_v19  ;;  %v534_v39 = vmul.f32 %v828_v38, %v85_v18 }
  0x84   :  { %68 = vrot.lane.b32.xlu0 %v66_v17, %s921_s24 }
  0x85   :  { %58 = vrot.lane.b32.xlu1 %v56_v21, %s922_s25 }
  0x87   :  { %v95_v23 = vpop.permute.xlu1 %94  ;;  %v105_v24 = vpop.permute.xlu0 %104 }
  0x88   :  { %v97_v25 = vmul.f32 %v819_v20, %v95_v23  ;;  %89 = vrot.lane.b32.xlu0 %v87_v22, %s920_s21  ;;  %v107_v26 = vmul.f32 %v819_v20, %v105_v24  ;;  %v540_v40 = vmul.f32 %v828_v38, %v95_v23  ;;  %v546_v42 = vmul.f32 %v828_v38, %v105_v24 }
  0x8a   :  { %99 = vrot.lane.b32.xlu1 %v97_v25, %s922_s25 }
  0x8c   :  { %109 = vrot.lane.b32.xlu0 %v107_v26, %s921_s24  ;;  %v126_v30 = vpop.permute.xlu1 %125  ;;  %v146_v34 = vpop.permute.xlu0 %145 }
  0x8d   :  { %v128_v32 = vmul.f32 %v820_v28, %v126_v30  ;;  %v148_v37 = vmul.f32 %v820_v28, %v146_v34  ;;  %v559_v43 = vmul.f32 %v829_v41, %v126_v30  ;;  %v571_v45 = vmul.f32 %v829_v41, %v146_v34 }
  0x8e   :  { %511 = vrot.lane.b32.xlu1 %v509_v29, %s920_s21 }
  0x90   :  { %517 = vrot.lane.b32.xlu0 %v515_v31, %s922_s25 }
  0x91   :  { %v136_v33 = vpop.permute.xlu1 %135 }
  0x92   :  { %130 = vrot.lane.b32.xlu1 %v128_v32, %s920_s21  ;;  %v138_v36 = vmul.f32 %v820_v28, %v136_v33  ;;  %v565_v44 = vmul.f32 %v829_v41, %v136_v33 }
  0x94   :  { %523 = vrot.lane.b32.xlu0 %v521_v35, %s921_s24 }
  0x96   :  { %140 = vrot.lane.b32.xlu1 %v138_v36, %s922_s25  ;;  %v35_v46 = vpop.permute.xlu1 %34 }
  0x97   :  { %v41_v50 = vmul.f32 %v818_v13, %v35_v46  ;;  %v508_v62 = vmul.f32 %v827_v27, %v35_v46 }
  0x98   :  { %150 = vrot.lane.b32.xlu0 %v148_v37, %s921_s24 }
  0x9a   :  { %536 = vrot.lane.b32.xlu1 %v534_v39, %s920_s21 }
  0x9b   :  { %v75_v47 = vpop.permute.xlu1 %74 }
  0x9c   :  { %542 = vrot.lane.b32.xlu0 %v540_v40, %s922_s25  ;;  %v81_v55 = vmul.f32 %v819_v20, %v75_v47  ;;  %v532_v22 = vmul.f32 %v828_v38, %v75_v47 }
  0x9e   :  { %548 = vrot.lane.b32.xlu1 %v546_v42, %s921_s24 }
  0xa0   :  { %561 = vrot.lane.b32.xlu0 %v559_v43, %s920_s21  ;;  %v116_v48 = vpop.permute.xlu1 %115  ;;  %v20_v43 = vld [vmem:[%s1318_s2] sm:$0x3f]  ;;  %s926_s2 = smov 5  }
  0xa1   :  { %v122_v14 = vmul.f32 %v820_v28, %v116_v48  ;;  %v557_v33 = vmul.f32 %v829_v41, %v116_v48  ;;  %v22_v41 = vmax.f32 %v20_v43, 0.0 }
  0xa2   :  { %567 = vrot.lane.b32.xlu1 %v565_v44, %s922_s25  ;;  %v1035_v44 = vld [vmem:[%s1319_s3] sm:$0x7]  ;;  %s927_s3 = smov 6  }
  0xa4   :  { %573 = vrot.lane.b32.xlu0 %v571_v45, %s921_s24 }
  0xf2   :  { %v49_v49 = vpop.permute.xlu0 %48 }
  0xf3   :  { %v51_v51 = vadd.f32 %v49_v49, %v41_v50 }
  0xf6   :  { %v69_v52 = vpop.permute.xlu0 %68 }
  0xf7   :  { %v59_v53 = vpop.permute.xlu1 %58 }
  0xf8   :  { %v61_v54 = vadd.f32 %v59_v53, %v51_v51 }
  0xfa   :  { %v71_v56 = vadd.f32 %v69_v52, %v61_v54  ;;  %v90_v57 = vpop.permute.xlu0 %89 }
  0xfc   :  { %v82_v58 = vadd.f32 %v81_v55, %v71_v56  ;;  %v100_v59 = vpop.permute.xlu1 %99 }
  0xfe   :  { %v92_v60 = vadd.f32 %v90_v57, %v82_v58  ;;  %v110_v61 = vpop.permute.xlu0 %109  ;;  %v931_v57 = vmov 14  }
 0x100   :  { %v102_v63 = vadd.f32 %v100_v59, %v92_v60  ;;  %v512_v1 = vpop.permute.xlu1 %511  ;;  %v932_v60 = vmov 17  }
 0x101   :  { %v514_v2 = vadd.f32 %v512_v1, %v508_v62  ;;  %v933_v1 = vmov 15  }
 0x102   :  { %v112_v15 = vadd.f32 %v110_v61, %v102_v63  ;;  %v518_v16 = vpop.permute.xlu0 %517 }
 0x103   :  { %v520_v18 = vadd.f32 %v518_v16, %v514_v2  ;;  %v934_v2 = vmov 21  }
 0x104   :  { %v123_v17 = vadd.f32 %v122_v14, %v112_v15  ;;  %v131_v13 = vpop.permute.xlu1 %130  ;;  %v935_v15 = vmov 18  }
 0x106   :  { %v133_v19 = vadd.f32 %v131_v13, %v123_v17  ;;  %v524_v21 = vpop.permute.xlu0 %523  ;;  %v936_v17 = vmov 12   ;;  %v937_v13 = vmov 19  }
 0x107   :  { %v526_v20 = vadd.f32 %v524_v21, %v520_v18  ;;  %v938_v18 = vmov 22   ;;  %v940_v21 = vmov 16  }
 0x108   :  { %v141_v23 = vpop.permute.xlu1 %140 }
 0x109   :  { %v533_v24 = vadd.f32 %v532_v22, %v526_v20  ;;  %v143_v25 = vadd.f32 %v141_v23, %v133_v19  ;;  %v939_v19 = vmov 23  }
 0x10a   :  { %v151_v26 = vpop.permute.xlu0 %150 }
 0x10b   :  { %v153_v29 = vadd.f32 %v151_v26, %v143_v25 }
 0x10c   :  { %v537_v30 = vpop.permute.xlu1 %536 }
 0x10d   :  { %v539_v27 = vadd.f32 %v537_v30, %v533_v24  ;;  %176 = vrot.lane.b32.xlu0 %v153_v29, %s923_s9  ;;  %165 = vrot.lane.b32.xlu1 %v153_v29, %s924_s10  ;;  %v156_v45 = vadd.f32 %v153_v29, %v20_v43 }
 0x10e   :  { %v543_v28 = vpop.permute.xlu0 %542 }
 0x10f   :  { %v545_v31 = vadd.f32 %v543_v28, %v539_v27  ;;  %v157_v46 = vmax.f32 %v156_v45, 0.0 }
 0x110   :  { %v549_v32 = vpop.permute.xlu1 %548 }
 0x111   :  { %v551_v34 = vadd.f32 %v549_v32, %v545_v31  ;;  %187 = vrot.lane.b32.xlu1 %v153_v29, %s925_s11 }
 0x112   :  { %v562_v35 = vpop.permute.xlu0 %561 }
 0x113   :  { %v558_v36 = vadd.f32 %v557_v33, %v551_v34 }
 0x114   :  { %v568_v38 = vpop.permute.xlu1 %567 }
 0x115   :  { %v564_v37 = vadd.f32 %v562_v35, %v558_v36 }
 0x116   :  { %v574_v40 = vpop.permute.xlu0 %573 }
 0x117   :  { %v570_v39 = vadd.f32 %v568_v38, %v564_v37 }
 0x119   :  { %v576_v42 = vadd.f32 %v574_v40, %v570_v39 }
 0x11b   :  { %586 = vrot.lane.b32.xlu0 %v576_v42, %s924_s10  ;;  %596 = vrot.lane.b32.xlu1 %v576_v42, %s923_s9  ;;  %v578_v47 = vadd.f32 %v576_v42, %v20_v43 }
 0x11f   :  { %606 = vrot.lane.b32.xlu0 %v576_v42, %s925_s11  ;;  %26 = vperm.xlu1 %882, %v22_v41  }
 0x123   :  { %210 = vperm.xlu0 %883, %v1035_v44   ;;  %884 = vset.pattern.permute.xlu1 %v911_v4  ;;  %v579_v4 = vmax.f32 %v578_v47, 0.0 }
 0x124   :  { %220 = vperm.xlu1 %884, %v1035_v44  }
 0x127   :  { %886 = vset.pattern.permute.xlu0 %v910_v3 }
 0x128   :  { %251 = vperm.xlu0 %886, %v1035_v44   ;;  %885 = vset.pattern.permute.xlu1 %v908_v0 }
 0x129   :  { %230 = vperm.xlu1 %885, %v1035_v44  }
 0x12c   :  { %159 = vrot.lane.b32.xlu0 %v157_v46, %s926_s2 }
 0x12d   :  { %887 = vset.pattern.permute.xlu1 %v912_v5  ;;  %889 = vset.pattern.permute.xlu0 %v914_v7  ;;  %v929_v7 = vmov 13  }
 0x12e   :  { %261 = vperm.xlu1 %887, %v1035_v44  }
 0x130   :  { %581 = vrot.lane.b32.xlu0 %v579_v4, %s926_s2 }
 0x132   :  { %888 = vset.pattern.permute.xlu1 %v913_v6 }
 0x133   :  { %271 = vperm.xlu1 %888, %v1035_v44  }
 0x137   :  { %890 = vset.pattern.permute.xlu1 %v916_v9 }
 0x17f   :  { %v177_v0 = vpop.permute.xlu0 %176  ;;  %v166_v3 = vpop.permute.xlu1 %165 }
 0x180   :  { %v179_v48 = vadd.f32 %v177_v0, %v20_v43  ;;  %v168_v49 = vadd.f32 %v166_v3, %v20_v43 }
 0x182   :  { %v180_v50 = vmax.f32 %v179_v48, 0.0  ;;  %v169_v51 = vmax.f32 %v168_v49, 0.0 }
 0x183   :  { %v188_v5 = vpop.permute.xlu1 %187 }
 0x184   :  { %171 = vrot.lane.b32.xlu1 %v169_v51, %s927_s3  ;;  %182 = vrot.lane.b32.xlu0 %v180_v50, %s928_s16  ;;  %v190_v6 = vadd.f32 %v188_v5, %v20_v43 }
 0x186   :  { %v191_v54 = vmax.f32 %v190_v6, 0.0 }
 0x188   :  { %302 = vperm.xlu1 %890, %v1035_v44   ;;  %292 = vperm.xlu0 %889, %v1035_v44  }
 0x18c   :  { %891 = vset.pattern.permute.xlu1 %v915_v8  ;;  %892 = vset.pattern.permute.xlu0 %v929_v7 }
 0x18d   :  { %v587_v9 = vpop.permute.xlu0 %586  ;;  %312 = vperm.xlu1 %891, %v1035_v44   ;;  %v597_v52 = vpop.permute.xlu1 %596 }
 0x18e   :  { %v599_v53 = vadd.f32 %v597_v52, %v20_v43  ;;  %v589_v55 = vadd.f32 %v587_v9, %v20_v43 }
 0x190   :  { %v600_v56 = vmax.f32 %v599_v53, 0.0  ;;  %v590_v58 = vmax.f32 %v589_v55, 0.0 }
 0x191   :  { %193 = vrot.lane.b32.xlu1 %v191_v54, %s930_s17  ;;  %v607_v59 = vpop.permute.xlu0 %606 }
 0x192   :  { %602 = vrot.lane.b32.xlu0 %v600_v56, %s928_s16  ;;  %893 = vset.pattern.permute.xlu1 %v931_v57  ;;  %v609_v8 = vadd.f32 %v607_v59, %v20_v43  ;;  %v941_v59 = vmov 20  }
 0x194   :  { %v610_v62 = vmax.f32 %v609_v8, 0.0 }
 0x195   :  { %592 = vrot.lane.b32.xlu1 %v590_v58, %s927_s3 }
 0x196   :  { %333 = vperm.xlu0 %892, %v1035_v44  }
 0x199   :  { %343 = vperm.xlu1 %893, %v1035_v44  }
 0x19a   :  { %895 = vset.pattern.permute.xlu0 %v932_v60  ;;  %v1063_v61 = vpop.permute.xlu1 %26 }
 0x19b   :  { %374 = vperm.xlu0 %895, %v1035_v44   ;;  %155 = vst.msk [vmem:[#allocation2] sm:$0x3f] %vm154_vm0, %v1063_v61 }
 0x19d   :  { %612 = vrot.lane.b32.xlu1 %v610_v62, %s930_s17 }
 0x19e   :  { %v1069_v63 = vpop.permute.xlu0 %210  ;;  %894 = vset.pattern.permute.xlu1 %v933_v1 }
 0x19f   :  { %898 = vset.pattern.permute.xlu0 %v934_v2  ;;  %v221_v22 = vpop.permute.xlu1 %220 }
 0x1a0   :  { %415 = vperm.xlu0 %898, %v1035_v44  }
 0x1a1   :  { %353 = vperm.xlu1 %894, %v1035_v44  }
 0x1a3   :  { %v1073_v14 = vpop.permute.xlu0 %251 }
 0x1a4   :  { %901 = vset.pattern.permute.xlu0 %v917_v10  ;;  %v1087_v20 = vpop.permute.xlu1 %230 }
 0x1a5   :  { %896 = vset.pattern.permute.xlu1 %v935_v15  ;;  %201 = vperm.xlu0 %901, %v1035_v44  }
 0x1a6   :  { %384 = vperm.xlu1 %896, %v1035_v44  }
 0x1a7   :  { %v160_v16 = vpop.permute.xlu0 %159 }
 0x1a8   :  { %163 = vst.msk [vmem:[#allocation2] sm:$0x3f] %vm162_vm1, %v160_v16 }
 0x1a9   :  { %904 = vset.pattern.permute.xlu0 %v936_v17  ;;  %v1089_v23 = vpop.permute.xlu1 %261 }
 0x1aa   :  { %897 = vset.pattern.permute.xlu1 %v937_v13  ;;  %323 = vperm.xlu0 %904, %v1035_v44  }
 0x1ab   :  { %394 = vperm.xlu1 %897, %v1035_v44   ;;  %v582_v25 = vpop.permute.xlu0 %581 }
 0x1ae   :  { %905 = vset.pattern.permute.xlu0 %v940_v21  ;;  %v1091_v24 = vpop.permute.xlu1 %271 }
 0x1af   :  { %899 = vset.pattern.permute.xlu1 %v938_v18 }
 0x1b0   :  { %425 = vperm.xlu1 %899, %v1035_v44  }
 0x1b4   :  { %900 = vset.pattern.permute.xlu1 %v939_v19 }
 0x1b5   :  { %435 = vperm.xlu1 %900, %v1035_v44  }
 0x1b9   :  { %902 = vset.pattern.permute.xlu1 %v918_v11 }
 0x1ba   :  { %241 = vperm.xlu1 %902, %v1035_v44  }
 0x1be   :  { %903 = vset.pattern.permute.xlu1 %v919_v12 }
 0x1bf   :  { %282 = vperm.xlu1 %903, %v1035_v44  }
 0x1f6   :  { %v172_v26 = vpop.permute.xlu1 %171  ;;  %v183_v29 = vpop.permute.xlu0 %182 }
 0x1f7   :  { %175 = vst.msk [vmem:[#allocation2] sm:$0x3f] %vm174_vm2, %v172_v26 }
 0x1f8   :  { %186 = vst.msk [vmem:[#allocation2] sm:$0x3f] %vm185_vm3, %v183_v29 }
 0x203   :  { %v1095_v11 = vpop.permute.xlu1 %302  ;;  %v293_v28 = vpop.permute.xlu0 %292 }
 0x207   :  { %v603_v40 = vpop.permute.xlu0 %602 }
 0x208   :  { %v1097_v12 = vpop.permute.xlu1 %312 }
 0x20c   :  { %v194_v30 = vpop.permute.xlu1 %193 }
 0x20d   :  { %197 = vst.msk [vmem:[#allocation2] sm:$0x3f] %vm196_vm4, %v194_v30 }
 0x210   :  { %v593_v27 = vpop.permute.xlu1 %592 }
 0x211   :  { %v334_v47 = vpop.permute.xlu0 %333 }
 0x214   :  { %v1100_v31 = vld [vmem:[#allocation2] ss:$0 sm:$0xff]  ;;  %v1102_v32 = vld [vmem:[#allocation2 + $0x1] ss:$0 sm:$0xff]  ;;  %v1104_v33 = vld [vmem:[#allocation2 + $0x2] ss:$0 sm:$0xff]  ;;  %v1106_v34 = vpop.permute.xlu1 %343 }
 0x215   :  { %v1108_v35 = vld [vmem:[#allocation2 + $0x3] ss:$0 sm:$0xff]  ;;  %v1110_v36 = vld [vmem:[#allocation2 + $0x4] ss:$0 sm:$0xff]  ;;  %v1112_v37 = vld [vmem:[#allocation2 + $0x5] ss:$0 sm:$0xff]  ;;  %v254_v38 = vmul.f32 %v1102_v32, %v1073_v14  ;;  %v213_v39 = vmul.f32 %v1100_v31, %v1069_v63  ;;  %v264_v43 = vmul.f32 %v1102_v32, %v1089_v23  ;;  %v223_v41 = vmul.f32 %v1100_v31, %v221_v22 }
 0x216   :  { %577 = vst.msk [vmem:[#allocation2] sm:$0x3f] %vm154_vm0, %v1063_v61  ;;  %v274_v45 = vmul.f32 %v1102_v32, %v1091_v24  ;;  %v233_v46 = vmul.f32 %v1100_v31, %v1087_v20  ;;  %v305_v4 = vmul.f32 %v1104_v33, %v1095_v11  ;;  %v295_v0 = vmul.f32 %v1104_v33, %v293_v28  ;;  %v375_v49 = vpop.permute.xlu0 %374 }
 0x217   :  { %584 = vst.msk [vmem:[#allocation2] sm:$0x3f] %vm162_vm1, %v582_v25  ;;  %256 = vrot.lane.b32.xlu0 %v254_v38, %s920_s21  ;;  %215 = vrot.lane.b32.xlu1 %v213_v39, %s920_s21  ;;  %v336_v3 = vmul.f32 %v1108_v35, %v334_v47  ;;  %v315_v48 = vmul.f32 %v1104_v33, %v1097_v12 }
 0x218   :  { %595 = vst.msk [vmem:[#allocation2] sm:$0x3f] %vm174_vm2, %v593_v27  ;;  %v613_v42 = vpop.permute.xlu1 %612  ;;  %v377_v51 = vmul.f32 %v1110_v36, %v375_v49  ;;  %v346_v56 = vmul.f32 %v1108_v35, %v1106_v34 }
 0x219   :  { %605 = vst.msk [vmem:[#allocation2] sm:$0x3f] %vm185_vm3, %v603_v40 }
 0x21a   :  { %615 = vst.msk [vmem:[#allocation2] sm:$0x3f] %vm196_vm4, %v613_v42 }
 0x21b   :  { %266 = vrot.lane.b32.xlu0 %v264_v43, %s922_s25  ;;  %225 = vrot.lane.b32.xlu1 %v223_v41, %s922_s25  ;;  %v416_v17 = vpop.permute.xlu0 %415 }
 0x21c   :  { %v354_v58 = vpop.permute.xlu1 %353  ;;  %v418_v13 = vmul.f32 %v1112_v37, %v416_v17 }
 0x21d   :  { %v356_v8 = vmul.f32 %v1108_v35, %v354_v58 }
 0x21f   :  { %276 = vrot.lane.b32.xlu0 %v274_v45, %s921_s24  ;;  %235 = vrot.lane.b32.xlu1 %v233_v46, %s921_s24 }
 0x221   :  { %v1145_v50 = vld [vmem:[#allocation2] ss:$0 sm:$0xff]  ;;  %v1152_v6 = vld [vmem:[#allocation2 + $0x1] ss:$0 sm:$0xff]  ;;  %v1169_v55 = vld [vmem:[#allocation2 + $0x2] ss:$0 sm:$0xff]  ;;  %v385_v61 = vpop.permute.xlu1 %384 }
 0x222   :  { %v622_v5 = vmul.f32 %v1145_v50, %v1069_v63  ;;  %v628_v7 = vmul.f32 %v1145_v50, %v221_v22  ;;  %v647_v9 = vmul.f32 %v1152_v6, %v1073_v14  ;;  %v634_v52 = vmul.f32 %v1145_v50, %v1087_v20  ;;  %v1185_v63 = vld [vmem:[#allocation2 + $0x3] ss:$0 sm:$0xff]  ;;  %v1201_v19 = vld [vmem:[#allocation2 + $0x4] ss:$0 sm:$0xff]  ;;  %v1214_v25 = vld [vmem:[#allocation2 + $0x5] ss:$0 sm:$0xff] }
 0x223   :  { %307 = vrot.lane.b32.xlu0 %v305_v4, %s922_s25  ;;  %297 = vrot.lane.b32.xlu1 %v295_v0, %s920_s21  ;;  %v653_v53 = vmul.f32 %v1152_v6, %v1089_v23  ;;  %v659_v54 = vmul.f32 %v1152_v6, %v1091_v24  ;;  %v672_v57 = vmul.f32 %v1169_v55, %v293_v28 }
 0x224   :  { %v678_v60 = vmul.f32 %v1169_v55, %v1095_v11  ;;  %v684_v62 = vmul.f32 %v1169_v55, %v1097_v12  ;;  %v387_v1 = vmul.f32 %v1110_v36, %v385_v61  ;;  %v697_v2 = vmul.f32 %v1185_v63, %v334_v47  ;;  %v202_v12 = vpop.permute.xlu0 %201 }
 0x225   :  { %v703_v16 = vmul.f32 %v1185_v63, %v1106_v34  ;;  %v709_v18 = vmul.f32 %v1185_v63, %v354_v58  ;;  %v722_v21 = vmul.f32 %v1201_v19, %v375_v49  ;;  %v728_v20 = vmul.f32 %v1201_v19, %v385_v61 }
 0x226   :  { %v395_v14 = vpop.permute.xlu1 %394  ;;  %v747_v26 = vmul.f32 %v1214_v25, %v416_v17  ;;  %v208_v39 = vmul.f32 %v1100_v31, %v202_v12 }
 0x227   :  { %317 = vrot.lane.b32.xlu0 %v315_v48, %s921_s24  ;;  %338 = vrot.lane.b32.xlu1 %v336_v3, %s920_s21  ;;  %v397_v15 = vmul.f32 %v1110_v36, %v395_v14  ;;  %v734_v24 = vmul.f32 %v1201_v19, %v395_v14 }
 0x228   :  { %v324_v27 = vpop.permute.xlu0 %323 }
 0x22b   :  { %624 = vrot.lane.b32.xlu0 %v622_v5, %s920_s21  ;;  %379 = vrot.lane.b32.xlu1 %v377_v51, %s920_s21 }
 0x22f   :  { %630 = vrot.lane.b32.xlu0 %v628_v7, %s922_s25  ;;  %649 = vrot.lane.b32.xlu1 %v647_v9, %s920_s21 }
 0x233   :  { %636 = vrot.lane.b32.xlu0 %v634_v52, %s921_s24  ;;  %655 = vrot.lane.b32.xlu1 %v653_v53, %s922_s25 }
 0x237   :  { %364 = vperm.xlu0 %905, %v1035_v44   ;;  %661 = vrot.lane.b32.xlu1 %v659_v54, %s921_s24 }
 0x23b   :  { %348 = vrot.lane.b32.xlu0 %v346_v56, %s922_s25  ;;  %674 = vrot.lane.b32.xlu1 %v672_v57, %s920_s21  ;;  %v621_v57 = vmul.f32 %v1145_v50, %v202_v12 }
 0x23c   :  { %906 = vset.pattern.permute.xlu0 %v941_v59 }
 0x23f   :  { %358 = vrot.lane.b32.xlu0 %v356_v8, %s921_s24  ;;  %680 = vrot.lane.b32.xlu1 %v678_v60, %s922_s25  ;;  %v330_v8 = vmul.f32 %v1108_v35, %v324_v27 }
 0x243   :  { %405 = vperm.xlu0 %906, %v1035_v44   ;;  %686 = vrot.lane.b32.xlu1 %v684_v62, %s921_s24  ;;  %v426_v44 = vpop.permute.xlu1 %425 }
 0x244   :  { %v753_v29 = vmul.f32 %v1214_v25, %v426_v44 }
 0x247   :  { %389 = vrot.lane.b32.xlu0 %v387_v1, %s922_s25  ;;  %699 = vrot.lane.b32.xlu1 %v697_v2, %s920_s21  ;;  %v436_v22 = vpop.permute.xlu1 %435 }
 0x248   :  { %907 = vset.pattern.permute.xlu0 %v917_v10  ;;  %v428_v10 = vmul.f32 %v1112_v37, %v426_v44  ;;  %v438_v23 = vmul.f32 %v1112_v37, %v436_v22  ;;  %v759_v11 = vmul.f32 %v1214_v25, %v436_v22 }
 0x24b   :  { %399 = vrot.lane.b32.xlu0 %v397_v15, %s921_s24  ;;  %705 = vrot.lane.b32.xlu1 %v703_v16, %s922_s25  ;;  %v242_v30 = vpop.permute.xlu1 %241 }
 0x24c   :  { %v248_v47 = vmul.f32 %v1102_v32, %v242_v30 }
 0x24f   :  { %711 = vrot.lane.b32.xlu1 %v709_v18, %s921_s24  ;;  %420 = vrot.lane.b32.xlu0 %v418_v13, %s920_s21  ;;  %v283_v28 = vpop.permute.xlu1 %282 }
 0x250   :  { %v289_v9 = vmul.f32 %v1104_v33, %v283_v28  ;;  %v645_v33 = vmul.f32 %v1152_v6, %v242_v30  ;;  %v670_v50 = vmul.f32 %v1169_v55, %v283_v28 }
 0x253   :  { %724 = vrot.lane.b32.xlu1 %v722_v21, %s920_s21  ;;  %430 = vrot.lane.b32.xlu0 %v428_v10, %s922_s25 }
 0x257   :  { %730 = vrot.lane.b32.xlu1 %v728_v20, %s922_s25  ;;  %440 = vrot.lane.b32.xlu0 %v438_v23, %s921_s24 }
 0x25b   :  { %736 = vrot.lane.b32.xlu1 %v734_v24, %s921_s24 }
 0x25f   :  { %749 = vrot.lane.b32.xlu1 %v747_v26, %s920_s21  ;;  %v695_v26 = vmul.f32 %v1185_v63, %v324_v27 }
 0x263   :  { %755 = vrot.lane.b32.xlu1 %v753_v29, %s922_s25 }
 0x267   :  { %761 = vrot.lane.b32.xlu1 %v759_v11, %s921_s24 }
 0x289   :  { %v216_v34 = vpop.permute.xlu1 %215  ;;  %v257_v38 = vpop.permute.xlu0 %256 }
 0x28a   :  { %v218_v43 = vadd.f32 %v216_v34, %v208_v39 }
 0x28d   :  { %v226_v40 = vpop.permute.xlu1 %225  ;;  %v267_v42 = vpop.permute.xlu0 %266 }
 0x28e   :  { %v228_v41 = vadd.f32 %v226_v40, %v218_v43 }
 0x291   :  { %v236_v45 = vpop.permute.xlu1 %235  ;;  %v277_v46 = vpop.permute.xlu0 %276 }
 0x292   :  { %v238_v4 = vadd.f32 %v236_v45, %v228_v41 }
 0x294   :  { %v249_v0 = vadd.f32 %v248_v47, %v238_v4 }
 0x295   :  { %v298_v3 = vpop.permute.xlu1 %297  ;;  %v308_v48 = vpop.permute.xlu0 %307 }
 0x296   :  { %v259_v49 = vadd.f32 %v257_v38, %v249_v0 }
 0x298   :  { %v269_v51 = vadd.f32 %v267_v42, %v259_v49 }
 0x299   :  { %v339_v5 = vpop.permute.xlu1 %338  ;;  %v318_v7 = vpop.permute.xlu0 %317 }
 0x29a   :  { %v279_v52 = vadd.f32 %v277_v46, %v269_v51 }
 0x29c   :  { %v290_v31 = vadd.f32 %v289_v9, %v279_v52 }
 0x29d   :  { %v380_v53 = vpop.permute.xlu1 %379  ;;  %v625_v54 = vpop.permute.xlu0 %624 }
 0x29e   :  { %v300_v56 = vadd.f32 %v298_v3, %v290_v31  ;;  %v627_v61 = vadd.f32 %v625_v54, %v621_v57 }
 0x2a0   :  { %v310_v58 = vadd.f32 %v308_v48, %v300_v56 }
 0x2a1   :  { %v650_v59 = vpop.permute.xlu1 %649  ;;  %v631_v32 = vpop.permute.xlu0 %630 }
 0x2a2   :  { %v320_v60 = vadd.f32 %v318_v7, %v310_v58  ;;  %v633_v1 = vadd.f32 %v631_v32, %v627_v61 }
 0x2a4   :  { %v331_v62 = vadd.f32 %v330_v8, %v320_v60 }
 0x2a5   :  { %v656_v2 = vpop.permute.xlu1 %655  ;;  %v637_v14 = vpop.permute.xlu0 %636 }
 0x2a6   :  { %v639_v15 = vadd.f32 %v637_v14, %v633_v1  ;;  %v341_v6 = vadd.f32 %v339_v5, %v331_v62 }
 0x2a8   :  { %v646_v16 = vadd.f32 %v645_v33, %v639_v15 }
 0x2a9   :  { %v662_v17 = vpop.permute.xlu1 %661 }
 0x2aa   :  { %v652_v44 = vadd.f32 %v650_v59, %v646_v16 }
 0x2ac   :  { %v658_v13 = vadd.f32 %v656_v2, %v652_v44 }
 0x2ad   :  { %v675_v18 = vpop.permute.xlu1 %674 }
 0x2ae   :  { %v664_v10 = vadd.f32 %v662_v17, %v658_v13 }
 0x2b0   :  { %v671_v21 = vadd.f32 %v670_v50, %v664_v10 }
 0x2b1   :  { %v681_v22 = vpop.permute.xlu1 %680 }
 0x2b2   :  { %v677_v35 = vadd.f32 %v675_v18, %v671_v21  ;;  %v365_v20 = vpop.permute.xlu0 %364 }
 0x2b3   :  { %v371_v40 = vmul.f32 %v1110_v36, %v365_v20  ;;  %v720_v63 = vmul.f32 %v1201_v19, %v365_v20 }
 0x2b4   :  { %v683_v23 = vadd.f32 %v681_v22, %v677_v35 }
 0x2b5   :  { %v687_v24 = vpop.permute.xlu1 %686 }
 0x2b6   :  { %v689_v29 = vadd.f32 %v687_v24, %v683_v23  ;;  %v349_v11 = vpop.permute.xlu0 %348 }
 0x2b7   :  { %v351_v30 = vadd.f32 %v349_v11, %v341_v6 }
 0x2b8   :  { %v696_v12 = vadd.f32 %v695_v26, %v689_v29 }
 0x2b9   :  { %v700_v34 = vpop.permute.xlu1 %699 }
 0x2ba   :  { %v359_v38 = vpop.permute.xlu0 %358  ;;  %v702_v28 = vadd.f32 %v700_v34, %v696_v12 }
 0x2bb   :  { %v361_v39 = vadd.f32 %v359_v38, %v351_v30  ;;  %v444_v38 = vld [vmem:[%s1317_s0] sm:$0x7] }
 0x2bd   :  { %v706_v55 = vpop.permute.xlu1 %705  ;;  %v372_v43 = vadd.f32 %v371_v40, %v361_v39  ;;  %v765_v39 = vld [vmem:[%s1317_s0 + $0x3] sm:$0x7]  ;;  %v453_v40 = vld [vmem:[%s1317_s0] sm:$0x7] }
 0x2be   :  { %v406_v42 = vpop.permute.xlu0 %405  ;;  %v708_v41 = vadd.f32 %v706_v55, %v702_v28  ;;  %v768_v28 = vld [vmem:[%s1317_s0 + $0x3] sm:$0x7] }
 0x2bf   :  { %v382_v4 = vadd.f32 %v380_v53, %v372_v43  ;;  %v412_v51 = vmul.f32 %v1112_v37, %v406_v42  ;;  %v745_v53 = vmul.f32 %v1214_v25, %v406_v42  ;;  %v21_v25 = vld [vmem:[%s1320_s4] sm:$0x7] }
 0x2c0   :  { %v23_v2 = vmax.f32 %v21_v25, 0.0 }
 0x2c1   :  { %v712_v45 = vpop.permute.xlu1 %711 }
 0x2c2   :  { %v714_v46 = vadd.f32 %v712_v45, %v708_v41  ;;  %v390_v47 = vpop.permute.xlu0 %389 }
 0x2c3   :  { %v392_v27 = vadd.f32 %v390_v47, %v382_v4  ;;  %v463_v47 = vld [vmem:[%s1317_s0] sm:$0x7] }
 0x2c4   :  { %v721_v3 = vadd.f32 %v720_v63, %v714_v46 }
 0x2c5   :  { %v725_v0 = vpop.permute.xlu1 %724 }
 0x2c6   :  { %v400_v48 = vpop.permute.xlu0 %399  ;;  %v727_v36 = vadd.f32 %v725_v0, %v721_v3 }
 0x2c7   :  { %v402_v49 = vadd.f32 %v400_v48, %v392_v27  ;;  %v477_v27 = vld [vmem:[%s1317_s0] sm:$0x7]  ;;  %v777_v48 = vld [vmem:[%s1317_s0 + $0x3] sm:$0x7] }
 0x2c9   :  { %v731_v5 = vpop.permute.xlu1 %730  ;;  %v413_v9 = vadd.f32 %v412_v51, %v402_v49  ;;  %v490_v49 = vld [vmem:[%s1317_s0] sm:$0x7] }
 0x2ca   :  { %v421_v7 = vpop.permute.xlu0 %420  ;;  %v733_v52 = vadd.f32 %v731_v5, %v727_v36 }
 0x2cb   :  { %v423_v57 = vadd.f32 %v421_v7, %v413_v9  ;;  %v790_v9 = vld [vmem:[%s1317_s0 + $0x3] sm:$0x7] }
 0x2cd   :  { %v737_v31 = vpop.permute.xlu1 %736 }
 0x2ce   :  { %v739_v54 = vadd.f32 %v737_v31, %v733_v52  ;;  %v431_v56 = vpop.permute.xlu0 %430 }
 0x2cf   :  { %v433_v58 = vadd.f32 %v431_v56, %v423_v57 }
 0x2d0   :  { %v746_v59 = vadd.f32 %v745_v53, %v739_v54  ;;  %v802_v54 = vld [vmem:[%s1317_s0 + $0x3] sm:$0x7] }
 0x2d1   :  { %v750_v19 = vpop.permute.xlu1 %749 }
 0x2d2   :  { %v441_v32 = vpop.permute.xlu0 %440  ;;  %v752_v37 = vadd.f32 %v750_v19, %v746_v59 }
 0x2d3   :  { %v443_v8 = vadd.f32 %v441_v32, %v433_v58 }
 0x2d5   :  { %v756_v60 = vpop.permute.xlu1 %755  ;;  %465 = vrot.lane.b32.xlu0 %v443_v8, %s924_s10  ;;  %v454_v14 = vadd.f32 %v443_v8, %v21_v25 }
 0x2d6   :  { %v758_v61 = vadd.f32 %v756_v60, %v752_v37 }
 0x2d7   :  { %v455_v33 = vmax.f32 %v454_v14, 0.0 }
 0x2d9   :  { %v762_v62 = vpop.permute.xlu1 %761  ;;  %478 = vrot.lane.b32.xlu0 %v443_v8, %s923_s9 }
 0x2da   :  { %v764_v1 = vadd.f32 %v762_v62, %v758_v61 }
 0x2dc   :  { %779 = vrot.lane.b32.xlu1 %v764_v1, %s924_s10  ;;  %v769_v15 = vadd.f32 %v764_v1, %v21_v25 }
 0x2dd   :  { %491 = vrot.lane.b32.xlu0 %v443_v8, %s925_s11 }
 0x2de   :  { %v770_v16 = vmax.f32 %v769_v15, 0.0 }
 0x2e0   :  { %791 = vrot.lane.b32.xlu1 %v764_v1, %s923_s9 }
 0x2e1   :  { %447 = vperm.xlu0 %907, %v23_v2  }
 0x2e4   :  { %803 = vrot.lane.b32.xlu1 %v764_v1, %s925_s11 }
 0x2e8   :  { %457 = vrot.lane.b32.xlu1 %v455_v33, %s926_s2 }
 0x2ec   :  { %772 = vrot.lane.b32.xlu1 %v770_v16, %s926_s2 }
 0x347   :  { %v466_v17 = vpop.permute.xlu0 %465 }
 0x348   :  { %v468_v44 = vadd.f32 %v466_v17, %v21_v25 }
 0x34a   :  { %v469_v13 = vmax.f32 %v468_v44, 0.0 }
 0x34b   :  { %v479_v18 = vpop.permute.xlu0 %478 }
 0x34c   :  { %v481_v50 = vadd.f32 %v479_v18, %v21_v25  ;;  %471 = vrot.lane.b32.xlu0 %v469_v13, %s927_s3 }
 0x34e   :  { %v482_v10 = vmax.f32 %v481_v50, 0.0  ;;  %v780_v21 = vpop.permute.xlu1 %779 }
 0x34f   :  { %v782_v22 = vadd.f32 %v780_v21, %v21_v25  ;;  %v492_v35 = vpop.permute.xlu0 %491 }
 0x350   :  { %v494_v20 = vadd.f32 %v492_v35, %v21_v25  ;;  %484 = vrot.lane.b32.xlu0 %v482_v10, %s928_s16 }
 0x351   :  { %v783_v23 = vmax.f32 %v782_v22, 0.0 }
 0x352   :  { %v495_v24 = vmax.f32 %v494_v20, 0.0  ;;  %v792_v26 = vpop.permute.xlu1 %791 }
 0x353   :  { %v794_v29 = vadd.f32 %v792_v26, %v21_v25  ;;  %785 = vrot.lane.b32.xlu1 %v783_v23, %s927_s3 }
 0x354   :  { %497 = vrot.lane.b32.xlu0 %v495_v24, %s930_s17 }
 0x355   :  { %v795_v11 = vmax.f32 %v794_v29, 0.0 }
 0x356   :  { %v804_v6 = vpop.permute.xlu1 %803 }
 0x357   :  { %v806_v12 = vadd.f32 %v804_v6, %v21_v25  ;;  %797 = vrot.lane.b32.xlu1 %v795_v11, %s928_s16 }
 0x359   :  { %v807_v30 = vmax.f32 %v806_v12, 0.0 }
 0x35a   :  { %v458_v34 = vpop.permute.xlu1 %457 }
 0x35b   :  { %809 = vrot.lane.b32.xlu1 %v807_v30, %s930_s17  ;;  %v460_v41 = vadd.f32 %v458_v34, %v453_v40 }
 0x35c   :  { %v448_v55 = vpop.permute.xlu0 %447 }
 0x35d   :  { %v450_v42 = vadd.f32 %v448_v55, %v444_v38  ;;  %v766_v43 = vadd.f32 %v765_v39, %v448_v55 }
 0x35e   :  { %v773_v45 = vpop.permute.xlu1 %772 }
 0x35f   :  { %452 = vst.msk [vmem:[%s1321_s5] sm:$0x7] %vm451_vm5, %v450_v42  ;;  %767 = vst.msk [vmem:[%s1321_s5 + $0x3] sm:$0x7] %vm451_vm5, %v766_v43  ;;  %v775_v46 = vadd.f32 %v773_v45, %v768_v28 }
 0x360   :  { %462 = vst.msk [vmem:[%s1321_s5] sm:$0x7] %vm461_vm6, %v460_v41 }
 0x361   :  { %776 = vst.msk [vmem:[%s1321_s5 + $0x3] sm:$0x7] %vm461_vm6, %v775_v46 }
 0x3be   :  { %v472_v4 = vpop.permute.xlu0 %471 }
 0x3bf   :  { %v474_v63 = vadd.f32 %v472_v4, %v463_v47 }
 0x3c1   :  { %476 = vst.msk [vmem:[%s1321_s5] sm:$0x7] %vm475_vm7, %v474_v63 }
 0x3c2   :  { %v485_v0 = vpop.permute.xlu0 %484 }
 0x3c3   :  { %v487_v3 = vadd.f32 %v485_v0, %v477_v27 }
 0x3c5   :  { %489 = vst.msk [vmem:[%s1321_s5] sm:$0x7] %vm488_vm8, %v487_v3  ;;  %v786_v51 = vpop.permute.xlu1 %785 }
 0x3c6   :  { %v788_v5 = vadd.f32 %v786_v51, %v777_v48  ;;  %v498_v36 = vpop.permute.xlu0 %497 }
 0x3c7   :  { %v500_v7 = vadd.f32 %v498_v36, %v490_v49 }
 0x3c8   :  { %789 = vst.msk [vmem:[%s1321_s5 + $0x3] sm:$0x7] %vm475_vm7, %v788_v5 }
 0x3c9   :  { %502 = vst.msk [vmem:[%s1321_s5] sm:$0x7] %vm501_vm9, %v500_v7  ;;  %v798_v52 = vpop.permute.xlu1 %797 }
 0x3ca   :  { %v800_v31 = vadd.f32 %v798_v52, %v790_v9 }
 0x3cc   :  { %801 = vst.msk [vmem:[%s1321_s5 + $0x3] sm:$0x7] %vm488_vm8, %v800_v31 }
 0x3cd   :  { %v810_v56 = vpop.permute.xlu1 %809 }
 0x3ce   :  { %v812_v57 = vadd.f32 %v810_v56, %v802_v54 }
 0x3d0   :  { %813 = vst.msk [vmem:[%s1321_s5 + $0x3] sm:$0x7] %vm501_vm9, %v812_v57 }

</bundles_post_ra>
